<compile_context>
chip_gen: v5e
topology: v5e:2x2
jax: 0.10.0
libtpu: 0.0.40
codegen_flags: <defaults>
</compile_context>

<pallas_src>
import jax
import jax.numpy as jnp
from jax import lax
from jax.experimental import pallas as pl
from jax.experimental.pallas import tpu as pltpu

EPS_FUSE = 1e-4


def bottom_up_fusion2_kernel(w_ref, p_ref, pp_ref, pt_ref, pb_ref,
                             ppt_ref, ppb_ref, dw_ref, pw_ref, bias_ref, o_ref):
    # w_ref    : SMEM (2,)            un-normalized fusion weights
    # p_ref    : VMEM (1, TH, W, C)   current-level tile (NHWC)
    # pp_ref   : VMEM (1, 2TH, W, 2C) 2x-res tile, column pairs folded into lanes
    # pt_ref   : VMEM (1, 1, W, C)    p row just above the tile (clamped)
    # pb_ref   : VMEM (1, 1, W, C)    p row just below the tile (clamped)
    # ppt_ref  : VMEM (1, 2, W, 2C)   pp rows feeding the pooled row above (clamped)
    # ppb_ref  : VMEM (1, 2, W, 2C)   pp rows feeding the pooled row below (clamped)
    # dw_ref   : VMEM (3, 3, C)       depthwise 3x3 weights (kh, kw, C)
    # pw_ref   : VMEM (C, C)          pointwise weights (C_in, C_out), BN scale folded
    # bias_ref : VMEM (1, C)          folded BatchNorm bias
    # o_ref    : VMEM (1, TH, W, C)
    TH = p_ref.shape[1]
    W = p_ref.shape[2]
    C = p_ref.shape[3]
    h = pl.program_id(1)
    nh = pl.num_programs(1)

    # ---- fast_normalize(weight): relu + sum-normalize (scalar SMEM math) -----
    w0 = jnp.maximum(w_ref[0], 0.0)
    w1 = jnp.maximum(w_ref[1], 0.0)
    inv = 1.0 / (w0 + w1 + EPS_FUSE)
    w0 = w0 * inv
    w1 = w1 * inv

    # ---- 2x2 / stride-2 max pool ---------------------------------------------
    # H direction first via a layout-free leading-dim reshape, then the W pair,
    # which lives in the two lane halves (even columns in [:C], odd in [C:]).
    def pool(x):                         # (2R, W, 2C) -> (R, W, C)
        r2 = x.shape[0]
        x = x.reshape(r2 // 2, 2, W, 2 * C)
        x = jnp.maximum(x[:, 0], x[:, 1])
        return jnp.maximum(x[..., :C], x[..., C:])

    pooled = pool(pp_ref[0])                              # (TH, W, C)

    # ---- weighted fusion (f32 VPU math) ---------------------------------------
    fused = w0 * p_ref[0] + w1 * pooled                   # (TH, W, C)

    # Halo rows: fused value of the row just above / below this tile, zeroed at
    # the image border (the clamped reads fetch a valid-but-unused row there).
    top = w0 * pt_ref[0] + w1 * pool(ppt_ref[0])          # (1, W, C)
    bot = w0 * pb_ref[0] + w1 * pool(ppb_ref[0])          # (1, W, C)
    top = top * jnp.where(h == 0, 0.0, 1.0)
    bot = bot * jnp.where(h == nh - 1, 0.0, 1.0)

    ext = jnp.concatenate([top, fused, bot], axis=0)      # (TH+2, W, C)

    # ---- depthwise 3x3 conv, padding=1 (cross-correlation, PyTorch layout) ----
    # W neighbours via zero-column concat (no wrap, no masks); H neighbours are
    # plain row slices of ext.
    zc = jnp.zeros((TH + 2, 1, C), jnp.float32)
    ext_l = jnp.concatenate([zc, ext[:, :W - 1, :]], axis=1)   # in[y, x-1]
    ext_r = jnp.concatenate([ext[:, 1:, :], zc], axis=1)       # in[y, x+1]

    d = dw_ref[...]                                        # (3, 3, C)

    def taps(i):
        # kernel row i (dy = i - 1) applied to ext rows [i, i + TH)
        sl = slice(i, i + TH)
        return (ext_l[sl] * d[i, 0][None, None, :]
                + ext[sl] * d[i, 1][None, None, :]
                + ext_r[sl] * d[i, 2][None, None, :])

    acc = taps(1)                  # dy =  0
    acc = acc + taps(0)            # dy = -1
    acc = acc + taps(2)            # dy = +1

    # ---- pointwise 1x1 conv on the MXU (BN scale already folded into pw) ------
    flat = acc.reshape(TH * W, C)
    out = jnp.dot(flat.astype(pw_ref.dtype), pw_ref[...],
                  preferred_element_type=jnp.float32)

    # ---- folded BatchNorm bias + ReLU ------------------------------------------
    out = jnp.maximum(out + bias_ref[...], 0.0)
    o_ref[...] = out.reshape(o_ref.shape).astype(o_ref.dtype)


def _pick_tile_h(H, target=8):
    th = min(H, target)
    while H % th != 0:
        th -= 1
    return th


def _vmem_limit_bytes():
    # Generation-aware cap: ~3/4 of physical VMEM, max 100 MiB
    # (v5e/v6e: 128 MiB physical; v7x: 64 MiB per TensorCore -> 48 MiB).
    try:
        cap = int(pltpu.get_tpu_info().vmem_capacity_bytes)
    except Exception:
        cap = 128 * 1024 * 1024
    return int(min((cap * 3) // 4, 100 * 1024 * 1024))


def bottom_up_fusion2_nhwc(p, pp, fuse_weight, dw, pw, bn_scale, bn_bias,
                           *, tile_h=8, mxu_dtype=jnp.float32):
    """Core NHWC entry point (no layout glue, no HBM channel padding)."""
    N, H, W, C = p.shape
    assert pp.shape == (N, 2 * H, 2 * W, C), pp.shape
    # NOTE: ceil_mode=True equals the floor pooling implemented here only because
    # pp is exactly (2H, 2W); odd pooled sizes are not supported by this kernel.

    TH = _pick_tile_h(H, tile_h)
    nH = H // TH

    # Fold pp's adjacent column pair into the lane dim (free row-major reshape):
    # lanes [0:C] hold even columns, [C:2C] hold odd columns.
    ppr = pp.reshape(N, 2 * H, W, 2 * C)

    # Fold the eval-mode BatchNorm scale into the pointwise weights; keep bias only.
    pw_folded = (pw * bn_scale[None, :]).astype(mxu_dtype)        # (C_in, C_out)
    bias = bn_bias.reshape(1, C).astype(jnp.float32)

    flops = int(N * H * W * C * (2 * C + 23))
    bytes_accessed = int(4 * (N * H * W * C * 6 + 9 * C + C * C + C + 2))

    grid_spec = pltpu.PrefetchScalarGridSpec(
        num_scalar_prefetch=0,
        grid=(N, nH),
        in_specs=[
            pl.BlockSpec(memory_space=pltpu.MemorySpace.SMEM),            # fusion weights
            pl.BlockSpec((1, TH, W, C), lambda n, h: (n, h, 0, 0)),       # p tile
            # pp tile (dominant DMA stream).
            pl.BlockSpec((1, 2 * TH, W, 2 * C), lambda n, h: (n, h, 0, 0)),
            # Halo rows (block size 1 / 2 along H -> block index == row index),
            # clamped at the image border; the kernel zeros them there.
            pl.BlockSpec((1, 1, W, C),
                         lambda n, h: (n, jnp.maximum(h * TH - 1, 0), 0, 0)),
            pl.BlockSpec((1, 1, W, C),
                         lambda n, h: (n, jnp.minimum(h * TH + TH, H - 1), 0, 0)),
            pl.BlockSpec((1, 2, W, 2 * C),
                         lambda n, h: (n, jnp.maximum(h * TH - 1, 0), 0, 0)),
            pl.BlockSpec((1, 2, W, 2 * C),
                         lambda n, h: (n, jnp.minimum(h * TH + TH, H - 1), 0, 0)),
            pl.BlockSpec((3, 3, C), lambda n, h: (0, 0, 0)),              # depthwise weights
            pl.BlockSpec((C, C), lambda n, h: (0, 0)),                    # pointwise (BN folded)
            pl.BlockSpec((1, C), lambda n, h: (0, 0)),                    # BN bias
        ],
        out_specs=pl.BlockSpec((1, TH, W, C), lambda n, h: (n, h, 0, 0)),
    )

    return pl.pallas_call(
        bottom_up_fusion2_kernel,
        out_shape=jax.ShapeDtypeStruct((N, H, W, C), jnp.float32),
        grid_spec=grid_spec,
        compiler_params=pltpu.CompilerParams(
            dimension_semantics=("parallel", "parallel"),
            vmem_limit_bytes=_vmem_limit_bytes()),
        cost_estimate=pl.CostEstimate(flops=flops, transcendentals=0,
                                      bytes_accessed=bytes_accessed),
    )(fuse_weight, p, ppr, p, p, ppr, ppr, dw, pw_folded, bias)


def bottom_up_fusion2(p_nchw, pp_nchw, fuse_weight, dw, pw, bn_scale, bn_bias,
                      **kwargs):
    """NCHW interface matching the PyTorch module."""
    # TODO(synk): these transposes are interface glue (one HBM copy each); an
    # NHWC surrounding model should call bottom_up_fusion2_nhwc directly.
    p = jnp.transpose(p_nchw, (0, 2, 3, 1))
    pp = jnp.transpose(pp_nchw, (0, 2, 3, 1))
    out = bottom_up_fusion2_nhwc(p, pp, fuse_weight, dw, pw, bn_scale, bn_bias,
                                 **kwargs)
    return jnp.transpose(out, (0, 3, 1, 2))


def reference(p_nchw, pp_nchw, fuse_weight, dw, pw, bn_scale, bn_bias):
    """Pure-JAX reference of the same forward pass (NCHW)."""
    C = p_nchw.shape[1]
    w = jnp.maximum(fuse_weight, 0.0)
    w = w / (jnp.sum(w) + EPS_FUSE)
    pooled = lax.reduce_window(pp_nchw, -jnp.inf, lax.max,
                               (1, 1, 2, 2), (1, 1, 2, 2), 'VALID')
    fused = w[0] * p_nchw + w[1] * pooled
    dw_oihw = jnp.transpose(dw, (2, 0, 1))[:, None, :, :]          # (C,1,3,3)
    y = lax.conv_general_dilated(fused, dw_oihw, (1, 1), ((1, 1), (1, 1)),
                                 feature_group_count=C,
                                 dimension_numbers=('NCHW', 'OIHW', 'NCHW'))
    pw_oihw = jnp.transpose(pw, (1, 0))[:, :, None, None]          # (Cout,Cin,1,1)
    y = lax.conv_general_dilated(y, pw_oihw, (1, 1), ((0, 0), (0, 0)),
                                 dimension_numbers=('NCHW', 'OIHW', 'NCHW'))
    y = y * bn_scale[None, :, None, None] + bn_bias[None, :, None, None]
    return jnp.maximum(y, 0.0)


if __name__ == "__main__":
    key = jax.random.PRNGKey(0)
    k1, k2, k3, k4, k5, k6 = jax.random.split(key, 6)
    N, C, H, W = 2, 8, 16, 16

    p = jax.random.normal(k1, (N, C, H, W), jnp.float32)
    pp = jax.random.normal(k2, (N, C, 2 * H, 2 * W), jnp.float32)

    # Parameters (deterministic, synthetic — matching __init__ shapes).
    fuse_weight = jnp.ones((2,), jnp.float32)                 # nn.Parameter(torch.ones((2,)))
    dw = jax.random.normal(k3, (3, 3, C), jnp.float32) * 0.1  # depthwise 3x3 (kh, kw, C)
    pw = jax.random.normal(k4, (C, C), jnp.float32) * 0.1     # pointwise (C_in, C_out)
    gamma = 1.0 + 0.1 * jax.random.normal(k5, (C,), jnp.float32)
    beta = 0.1 * jax.random.normal(k6, (C,), jnp.float32)
    # Fold eval-mode BatchNorm (running_mean=0, running_var=1) into scale/bias.
    bn_eps = 1e-5
    bn_scale = gamma / jnp.sqrt(1.0 + bn_eps)
    bn_bias = beta

    out = bottom_up_fusion2(p, pp, fuse_weight, dw, pw, bn_scale, bn_bias,
                            tile_h=8)                 # H=16, TH=8 -> exercises halo
    out = jax.block_until_ready(out)

    ref = reference(p, pp, fuse_weight, dw, pw, bn_scale, bn_bias)
    assert out.shape == (N, C, H, W)
    max_err = float(jnp.max(jnp.abs(out - ref)))
    assert jnp.allclose(out, ref, atol=1e-4, rtol=1e-4), max_err

    print("KERNEL_OK")
</pallas_src>

<mosaic_0001>
module attributes {stable_mosaic.version = 11 : i64} {
  func.func @bottom_up_fusion2_kernel(%arg0: i32, %arg1: i32, %arg2: memref<2xf32, #tpu.memory_space<smem>>, %arg3: memref<1x8x16x8xf32, #tpu.memory_space<vmem>>, %arg4: memref<1x16x16x16xf32, #tpu.memory_space<vmem>>, %arg5: memref<1x1x16x8xf32, #tpu.memory_space<vmem>>, %arg6: memref<1x1x16x8xf32, #tpu.memory_space<vmem>>, %arg7: memref<1x2x16x16xf32, #tpu.memory_space<vmem>>, %arg8: memref<1x2x16x16xf32, #tpu.memory_space<vmem>>, %arg9: memref<3x3x8xf32, #tpu.memory_space<vmem>>, %arg10: memref<8x8xf32, #tpu.memory_space<vmem>>, %arg11: memref<1x8xf32, #tpu.memory_space<vmem>>, %arg12: memref<1x8x16x8xf32, #tpu.memory_space<vmem>>) attributes {dimension_semantics = [#tpu.dimension_semantics<parallel>, #tpu.dimension_semantics<parallel>], iteration_bounds = array<i64: 2, 2>, scalar_prefetch = 0 : i64, scratch_operands = 0 : i64, tpu.core_type = #tpu.core_type<tc>, window_params = [{transform_indices = @transform_0, window_bounds = array<i64: 2>}, {transform_indices = @transform_1, window_bounds = array<i64: 1, 8, 16, 8>}, {transform_indices = @transform_2, window_bounds = array<i64: 1, 16, 16, 16>}, {transform_indices = @transform_3, window_bounds = array<i64: 1, 1, 16, 8>}, {transform_indices = @transform_4, window_bounds = array<i64: 1, 1, 16, 8>}, {transform_indices = @transform_5, window_bounds = array<i64: 1, 2, 16, 16>}, {transform_indices = @transform_6, window_bounds = array<i64: 1, 2, 16, 16>}, {pipeline_mode = #tpu.pipeline_mode<synchronous>, transform_indices = @transform_7, window_bounds = array<i64: 3, 3, 8>}, {pipeline_mode = #tpu.pipeline_mode<synchronous>, transform_indices = @transform_8, window_bounds = array<i64: 8, 8>}, {pipeline_mode = #tpu.pipeline_mode<synchronous>, transform_indices = @transform_9, window_bounds = array<i64: 1, 8>}, {transform_indices = @transform_10, window_bounds = array<i64: 1, 8, 16, 8>}]} {
    %c0 = arith.constant 0 : index
    %0 = memref.load %arg2[%c0] : memref<2xf32, #tpu.memory_space<smem>>
    %cst = arith.constant 0.000000e+00 : f32
    %1 = arith.maximumf %0, %cst : f32
    %c1 = arith.constant 1 : index
    %2 = memref.load %arg2[%c1] : memref<2xf32, #tpu.memory_space<smem>>
    %cst_0 = arith.constant 0.000000e+00 : f32
    %3 = arith.maximumf %2, %cst_0 : f32
    %4 = arith.addf %1, %3 : f32
    %cst_1 = arith.constant 9.99999974E-5 : f32
    %5 = arith.addf %4, %cst_1 : f32
    %cst_2 = arith.constant 1.000000e+00 : f32
    %6 = arith.divf %cst_2, %5 : f32
    %7 = arith.mulf %1, %6 : f32
    %8 = arith.mulf %3, %6 : f32
    %c0_3 = arith.constant 0 : index
    %c0_4 = arith.constant 0 : index
    %c0_5 = arith.constant 0 : index
    %c0_6 = arith.constant 0 : index
    %9 = vector.load %arg4[%c0_3, %c0_4, %c0_5, %c0_6] : memref<1x16x16x16xf32, #tpu.memory_space<vmem>>, vector<1x16x16x16xf32>
    %10 = vector.shape_cast %9 : vector<1x16x16x16xf32> to vector<16x16x16xf32>
    %11 = vector.shape_cast %10 : vector<16x16x16xf32> to vector<8x2x16x16xf32>
    %12 = vector.extract_strided_slice %11 {offsets = [0, 0, 0, 0], sizes = [8, 1, 16, 16], strides = [1, 1, 1, 1]} : vector<8x2x16x16xf32> to vector<8x1x16x16xf32>
    %13 = vector.shape_cast %12 : vector<8x1x16x16xf32> to vector<8x16x16xf32>
    %14 = vector.extract_strided_slice %11 {offsets = [0, 1, 0, 0], sizes = [8, 1, 16, 16], strides = [1, 1, 1, 1]} : vector<8x2x16x16xf32> to vector<8x1x16x16xf32>
    %15 = vector.shape_cast %14 : vector<8x1x16x16xf32> to vector<8x16x16xf32>
    %16 = arith.maximumf %13, %15 : vector<8x16x16xf32>
    %17 = vector.extract_strided_slice %16 {offsets = [0, 0, 0], sizes = [8, 16, 8], strides = [1, 1, 1]} : vector<8x16x16xf32> to vector<8x16x8xf32>
    %18 = vector.extract_strided_slice %16 {offsets = [0, 0, 8], sizes = [8, 16, 8], strides = [1, 1, 1]} : vector<8x16x16xf32> to vector<8x16x8xf32>
    %19 = arith.maximumf %17, %18 : vector<8x16x8xf32>
    %c0_7 = arith.constant 0 : index
    %c0_8 = arith.constant 0 : index
    %c0_9 = arith.constant 0 : index
    %c0_10 = arith.constant 0 : index
    %20 = vector.load %arg3[%c0_7, %c0_8, %c0_9, %c0_10] : memref<1x8x16x8xf32, #tpu.memory_space<vmem>>, vector<1x8x16x8xf32>
    %21 = vector.shape_cast %20 : vector<1x8x16x8xf32> to vector<8x16x8xf32>
    %22 = vector.broadcast %7 : f32 to vector<8x16x8xf32>
    %23 = arith.mulf %22, %21 : vector<8x16x8xf32>
    %24 = vector.broadcast %8 : f32 to vector<8x16x8xf32>
    %25 = arith.mulf %24, %19 : vector<8x16x8xf32>
    %26 = arith.addf %23, %25 : vector<8x16x8xf32>
    %c0_11 = arith.constant 0 : index
    %c0_12 = arith.constant 0 : index
    %c0_13 = arith.constant 0 : index
    %c0_14 = arith.constant 0 : index
    %27 = vector.load %arg5[%c0_11, %c0_12, %c0_13, %c0_14] : memref<1x1x16x8xf32, #tpu.memory_space<vmem>>, vector<1x1x16x8xf32>
    %28 = vector.shape_cast %27 : vector<1x1x16x8xf32> to vector<1x16x8xf32>
    %29 = vector.broadcast %7 : f32 to vector<1x16x8xf32>
    %30 = arith.mulf %29, %28 : vector<1x16x8xf32>
    %c0_15 = arith.constant 0 : index
    %c0_16 = arith.constant 0 : index
    %c0_17 = arith.constant 0 : index
    %c0_18 = arith.constant 0 : index
    %31 = vector.load %arg7[%c0_15, %c0_16, %c0_17, %c0_18] : memref<1x2x16x16xf32, #tpu.memory_space<vmem>>, vector<1x2x16x16xf32>
    %32 = vector.shape_cast %31 : vector<1x2x16x16xf32> to vector<2x16x16xf32>
    %33 = vector.shape_cast %32 : vector<2x16x16xf32> to vector<1x2x16x16xf32>
    %34 = vector.extract_strided_slice %33 {offsets = [0, 0, 0, 0], sizes = [1, 1, 16, 16], strides = [1, 1, 1, 1]} : vector<1x2x16x16xf32> to vector<1x1x16x16xf32>
    %35 = vector.shape_cast %34 : vector<1x1x16x16xf32> to vector<1x16x16xf32>
    %36 = vector.extract_strided_slice %33 {offsets = [0, 1, 0, 0], sizes = [1, 1, 16, 16], strides = [1, 1, 1, 1]} : vector<1x2x16x16xf32> to vector<1x1x16x16xf32>
    %37 = vector.shape_cast %36 : vector<1x1x16x16xf32> to vector<1x16x16xf32>
    %38 = arith.maximumf %35, %37 : vector<1x16x16xf32>
    %39 = vector.extract_strided_slice %38 {offsets = [0, 0, 0], sizes = [1, 16, 8], strides = [1, 1, 1]} : vector<1x16x16xf32> to vector<1x16x8xf32>
    %40 = vector.extract_strided_slice %38 {offsets = [0, 0, 8], sizes = [1, 16, 8], strides = [1, 1, 1]} : vector<1x16x16xf32> to vector<1x16x8xf32>
    %41 = arith.maximumf %39, %40 : vector<1x16x8xf32>
    %42 = vector.broadcast %8 : f32 to vector<1x16x8xf32>
    %43 = arith.mulf %42, %41 : vector<1x16x8xf32>
    %44 = arith.addf %30, %43 : vector<1x16x8xf32>
    %c0_19 = arith.constant 0 : index
    %c0_20 = arith.constant 0 : index
    %c0_21 = arith.constant 0 : index
    %c0_22 = arith.constant 0 : index
    %45 = vector.load %arg6[%c0_19, %c0_20, %c0_21, %c0_22] : memref<1x1x16x8xf32, #tpu.memory_space<vmem>>, vector<1x1x16x8xf32>
    %46 = vector.shape_cast %45 : vector<1x1x16x8xf32> to vector<1x16x8xf32>
    %47 = vector.broadcast %7 : f32 to vector<1x16x8xf32>
    %48 = arith.mulf %47, %46 : vector<1x16x8xf32>
    %c0_23 = arith.constant 0 : index
    %c0_24 = arith.constant 0 : index
    %c0_25 = arith.constant 0 : index
    %c0_26 = arith.constant 0 : index
    %49 = vector.load %arg8[%c0_23, %c0_24, %c0_25, %c0_26] : memref<1x2x16x16xf32, #tpu.memory_space<vmem>>, vector<1x2x16x16xf32>
    %50 = vector.shape_cast %49 : vector<1x2x16x16xf32> to vector<2x16x16xf32>
    %51 = vector.shape_cast %50 : vector<2x16x16xf32> to vector<1x2x16x16xf32>
    %52 = vector.extract_strided_slice %51 {offsets = [0, 0, 0, 0], sizes = [1, 1, 16, 16], strides = [1, 1, 1, 1]} : vector<1x2x16x16xf32> to vector<1x1x16x16xf32>
    %53 = vector.shape_cast %52 : vector<1x1x16x16xf32> to vector<1x16x16xf32>
    %54 = vector.extract_strided_slice %51 {offsets = [0, 1, 0, 0], sizes = [1, 1, 16, 16], strides = [1, 1, 1, 1]} : vector<1x2x16x16xf32> to vector<1x1x16x16xf32>
    %55 = vector.shape_cast %54 : vector<1x1x16x16xf32> to vector<1x16x16xf32>
    %56 = arith.maximumf %53, %55 : vector<1x16x16xf32>
    %57 = vector.extract_strided_slice %56 {offsets = [0, 0, 0], sizes = [1, 16, 8], strides = [1, 1, 1]} : vector<1x16x16xf32> to vector<1x16x8xf32>
    %58 = vector.extract_strided_slice %56 {offsets = [0, 0, 8], sizes = [1, 16, 8], strides = [1, 1, 1]} : vector<1x16x16xf32> to vector<1x16x8xf32>
    %59 = arith.maximumf %57, %58 : vector<1x16x8xf32>
    %60 = vector.broadcast %8 : f32 to vector<1x16x8xf32>
    %61 = arith.mulf %60, %59 : vector<1x16x8xf32>
    %62 = arith.addf %48, %61 : vector<1x16x8xf32>
    %c0_i32 = arith.constant 0 : i32
    %63 = arith.cmpi eq, %arg1, %c0_i32 : i32
    %cst_27 = arith.constant 0.000000e+00 : f32
    %cst_28 = arith.constant 1.000000e+00 : f32
    %64 = arith.select %63, %cst_27, %cst_28 : f32
    %65 = vector.broadcast %64 : f32 to vector<1x16x8xf32>
    %66 = arith.mulf %44, %65 : vector<1x16x8xf32>
    %c1_i32 = arith.constant 1 : i32
    %67 = arith.cmpi eq, %arg1, %c1_i32 : i32
    %cst_29 = arith.constant 0.000000e+00 : f32
    %cst_30 = arith.constant 1.000000e+00 : f32
    %68 = arith.select %67, %cst_29, %cst_30 : f32
    %69 = vector.broadcast %68 : f32 to vector<1x16x8xf32>
    %70 = arith.mulf %62, %69 : vector<1x16x8xf32>
    %71 = tpu.concatenate %66, %26, %70 in 0 : vector<1x16x8xf32>, vector<8x16x8xf32>, vector<1x16x8xf32> -> vector<10x16x8xf32>
    %cst_31 = arith.constant 0.000000e+00 : f32
    %72 = vector.broadcast %cst_31 : f32 to vector<10x1x8xf32>
    %73 = vector.extract_strided_slice %71 {offsets = [0, 0, 0], sizes = [10, 15, 8], strides = [1, 1, 1]} : vector<10x16x8xf32> to vector<10x15x8xf32>
    %74 = tpu.concatenate %72, %73 in 1 : vector<10x1x8xf32>, vector<10x15x8xf32> -> vector<10x16x8xf32>
    %75 = vector.extract_strided_slice %71 {offsets = [0, 1, 0], sizes = [10, 15, 8], strides = [1, 1, 1]} : vector<10x16x8xf32> to vector<10x15x8xf32>
    %76 = tpu.concatenate %75, %72 in 1 : vector<10x15x8xf32>, vector<10x1x8xf32> -> vector<10x16x8xf32>
    %c0_32 = arith.constant 0 : index
    %c0_33 = arith.constant 0 : index
    %c0_34 = arith.constant 0 : index
    %77 = vector.load %arg9[%c0_32, %c0_33, %c0_34] : memref<3x3x8xf32, #tpu.memory_space<vmem>>, vector<3x3x8xf32>
    %78 = vector.extract_strided_slice %74 {offsets = [1, 0, 0], sizes = [8, 16, 8], strides = [1, 1, 1]} : vector<10x16x8xf32> to vector<8x16x8xf32>
    %79 = vector.extract_strided_slice %77 {offsets = [1, 0, 0], sizes = [1, 1, 8], strides = [1, 1, 1]} : vector<3x3x8xf32> to vector<1x1x8xf32>
    %80 = vector.shape_cast %79 : vector<1x1x8xf32> to vector<8xf32>
    %81 = vector.shape_cast %80 : vector<8xf32> to vector<1x1x8xf32>
    %82 = vector.broadcast %81 : vector<1x1x8xf32> to vector<8x16x8xf32>
    %83 = arith.mulf %78, %82 : vector<8x16x8xf32>
    %84 = vector.extract_strided_slice %71 {offsets = [1, 0, 0], sizes = [8, 16, 8], strides = [1, 1, 1]} : vector<10x16x8xf32> to vector<8x16x8xf32>
    %85 = vector.extract_strided_slice %77 {offsets = [1, 1, 0], sizes = [1, 1, 8], strides = [1, 1, 1]} : vector<3x3x8xf32> to vector<1x1x8xf32>
    %86 = vector.shape_cast %85 : vector<1x1x8xf32> to vector<8xf32>
    %87 = vector.shape_cast %86 : vector<8xf32> to vector<1x1x8xf32>
    %88 = vector.broadcast %87 : vector<1x1x8xf32> to vector<8x16x8xf32>
    %89 = arith.mulf %84, %88 : vector<8x16x8xf32>
    %90 = arith.addf %83, %89 : vector<8x16x8xf32>
    %91 = vector.extract_strided_slice %76 {offsets = [1, 0, 0], sizes = [8, 16, 8], strides = [1, 1, 1]} : vector<10x16x8xf32> to vector<8x16x8xf32>
    %92 = vector.extract_strided_slice %77 {offsets = [1, 2, 0], sizes = [1, 1, 8], strides = [1, 1, 1]} : vector<3x3x8xf32> to vector<1x1x8xf32>
    %93 = vector.shape_cast %92 : vector<1x1x8xf32> to vector<8xf32>
    %94 = vector.shape_cast %93 : vector<8xf32> to vector<1x1x8xf32>
    %95 = vector.broadcast %94 : vector<1x1x8xf32> to vector<8x16x8xf32>
    %96 = arith.mulf %91, %95 : vector<8x16x8xf32>
    %97 = arith.addf %90, %96 : vector<8x16x8xf32>
    %98 = vector.extract_strided_slice %74 {offsets = [0, 0, 0], sizes = [8, 16, 8], strides = [1, 1, 1]} : vector<10x16x8xf32> to vector<8x16x8xf32>
    %99 = vector.extract_strided_slice %77 {offsets = [0, 0, 0], sizes = [1, 1, 8], strides = [1, 1, 1]} : vector<3x3x8xf32> to vector<1x1x8xf32>
    %100 = vector.shape_cast %99 : vector<1x1x8xf32> to vector<8xf32>
    %101 = vector.shape_cast %100 : vector<8xf32> to vector<1x1x8xf32>
    %102 = vector.broadcast %101 : vector<1x1x8xf32> to vector<8x16x8xf32>
    %103 = arith.mulf %98, %102 : vector<8x16x8xf32>
    %104 = vector.extract_strided_slice %71 {offsets = [0, 0, 0], sizes = [8, 16, 8], strides = [1, 1, 1]} : vector<10x16x8xf32> to vector<8x16x8xf32>
    %105 = vector.extract_strided_slice %77 {offsets = [0, 1, 0], sizes = [1, 1, 8], strides = [1, 1, 1]} : vector<3x3x8xf32> to vector<1x1x8xf32>
    %106 = vector.shape_cast %105 : vector<1x1x8xf32> to vector<8xf32>
    %107 = vector.shape_cast %106 : vector<8xf32> to vector<1x1x8xf32>
    %108 = vector.broadcast %107 : vector<1x1x8xf32> to vector<8x16x8xf32>
    %109 = arith.mulf %104, %108 : vector<8x16x8xf32>
    %110 = arith.addf %103, %109 : vector<8x16x8xf32>
    %111 = vector.extract_strided_slice %76 {offsets = [0, 0, 0], sizes = [8, 16, 8], strides = [1, 1, 1]} : vector<10x16x8xf32> to vector<8x16x8xf32>
    %112 = vector.extract_strided_slice %77 {offsets = [0, 2, 0], sizes = [1, 1, 8], strides = [1, 1, 1]} : vector<3x3x8xf32> to vector<1x1x8xf32>
    %113 = vector.shape_cast %112 : vector<1x1x8xf32> to vector<8xf32>
    %114 = vector.shape_cast %113 : vector<8xf32> to vector<1x1x8xf32>
    %115 = vector.broadcast %114 : vector<1x1x8xf32> to vector<8x16x8xf32>
    %116 = arith.mulf %111, %115 : vector<8x16x8xf32>
    %117 = arith.addf %110, %116 : vector<8x16x8xf32>
    %118 = arith.addf %97, %117 : vector<8x16x8xf32>
    %119 = vector.extract_strided_slice %74 {offsets = [2, 0, 0], sizes = [8, 16, 8], strides = [1, 1, 1]} : vector<10x16x8xf32> to vector<8x16x8xf32>
    %120 = vector.extract_strided_slice %77 {offsets = [2, 0, 0], sizes = [1, 1, 8], strides = [1, 1, 1]} : vector<3x3x8xf32> to vector<1x1x8xf32>
    %121 = vector.shape_cast %120 : vector<1x1x8xf32> to vector<8xf32>
    %122 = vector.shape_cast %121 : vector<8xf32> to vector<1x1x8xf32>
    %123 = vector.broadcast %122 : vector<1x1x8xf32> to vector<8x16x8xf32>
    %124 = arith.mulf %119, %123 : vector<8x16x8xf32>
    %125 = vector.extract_strided_slice %71 {offsets = [2, 0, 0], sizes = [8, 16, 8], strides = [1, 1, 1]} : vector<10x16x8xf32> to vector<8x16x8xf32>
    %126 = vector.extract_strided_slice %77 {offsets = [2, 1, 0], sizes = [1, 1, 8], strides = [1, 1, 1]} : vector<3x3x8xf32> to vector<1x1x8xf32>
    %127 = vector.shape_cast %126 : vector<1x1x8xf32> to vector<8xf32>
    %128 = vector.shape_cast %127 : vector<8xf32> to vector<1x1x8xf32>
    %129 = vector.broadcast %128 : vector<1x1x8xf32> to vector<8x16x8xf32>
    %130 = arith.mulf %125, %129 : vector<8x16x8xf32>
    %131 = arith.addf %124, %130 : vector<8x16x8xf32>
    %132 = vector.extract_strided_slice %76 {offsets = [2, 0, 0], sizes = [8, 16, 8], strides = [1, 1, 1]} : vector<10x16x8xf32> to vector<8x16x8xf32>
    %133 = vector.extract_strided_slice %77 {offsets = [2, 2, 0], sizes = [1, 1, 8], strides = [1, 1, 1]} : vector<3x3x8xf32> to vector<1x1x8xf32>
    %134 = vector.shape_cast %133 : vector<1x1x8xf32> to vector<8xf32>
    %135 = vector.shape_cast %134 : vector<8xf32> to vector<1x1x8xf32>
    %136 = vector.broadcast %135 : vector<1x1x8xf32> to vector<8x16x8xf32>
    %137 = arith.mulf %132, %136 : vector<8x16x8xf32>
    %138 = arith.addf %131, %137 : vector<8x16x8xf32>
    %139 = arith.addf %118, %138 : vector<8x16x8xf32>
    %140 = vector.shape_cast %139 : vector<8x16x8xf32> to vector<128x8xf32>
    %c0_35 = arith.constant 0 : index
    %c0_36 = arith.constant 0 : index
    %141 = vector.load %arg10[%c0_35, %c0_36] : memref<8x8xf32, #tpu.memory_space<vmem>>, vector<8x8xf32>
    %cst_37 = arith.constant dense<0.000000e+00> : vector<128x8xf32>
    %142 = tpu.matmul %140, %141, %cst_37 {dimension_numbers = #tpu.dot_dimension_numbers<[1], [0], [0], [1], [0, 0, 1, 1], [], []>} : vector<128x8xf32>, vector<8x8xf32>, vector<128x8xf32> -> vector<128x8xf32>
    %c0_38 = arith.constant 0 : index
    %c0_39 = arith.constant 0 : index
    %143 = vector.load %arg11[%c0_38, %c0_39] : memref<1x8xf32, #tpu.memory_space<vmem>>, vector<1x8xf32>
    %144 = vector.broadcast %143 : vector<1x8xf32> to vector<128x8xf32>
    %145 = arith.addf %142, %144 : vector<128x8xf32>
    %cst_40 = arith.constant 0.000000e+00 : f32
    %146 = vector.broadcast %cst_40 : f32 to vector<128x8xf32>
    %147 = arith.maximumf %145, %146 : vector<128x8xf32>
    %148 = vector.shape_cast %147 : vector<128x8xf32> to vector<1x8x16x8xf32>
    %c0_41 = arith.constant 0 : index
    %c0_42 = arith.constant 0 : index
    %c0_43 = arith.constant 0 : index
    %c0_44 = arith.constant 0 : index
    %149 = vector.load %arg12[%c0_41, %c0_42, %c0_43, %c0_44] : memref<1x8x16x8xf32, #tpu.memory_space<vmem>>, vector<1x8x16x8xf32>
    tpu.vector_store %arg12[%c0_41, %c0_42, %c0_43, %c0_44], %148 {strides = array<i32>} : memref<1x8x16x8xf32, #tpu.memory_space<vmem>>, vector<1x8x16x8xf32>,
    return
  }
  func.func @transform_0(%arg0: i32, %arg1: i32) -> i32 {
    %c0_i32 = arith.constant 0 : i32
    %c0_i32_0 = arith.constant 0 : i32
    return %c0_i32 : i32
  }
  func.func @transform_1(%arg0: i32, %arg1: i32) -> (i32, i32, i32, i32) {
    %c0_i32 = arith.constant 0 : i32
    %c0_i32_0 = arith.constant 0 : i32
    %c0_i32_1 = arith.constant 0 : i32
    return %arg0, %arg1, %c0_i32, %c0_i32_0 : i32, i32, i32, i32
  }
  func.func @transform_2(%arg0: i32, %arg1: i32) -> (i32, i32, i32, i32) {
    %c0_i32 = arith.constant 0 : i32
    %c0_i32_0 = arith.constant 0 : i32
    %c0_i32_1 = arith.constant 0 : i32
    return %arg0, %arg1, %c0_i32, %c0_i32_0 : i32, i32, i32, i32
  }
  func.func @transform_3(%arg0: i32, %arg1: i32) -> (i32, i32, i32, i32) {
    %c8_i32 = arith.constant 8 : i32
    %0 = arith.muli %arg1, %c8_i32 : i32
    %c1_i32 = arith.constant 1 : i32
    %1 = arith.subi %0, %c1_i32 : i32
    %c0_i32 = arith.constant 0 : i32
    %2 = arith.maxsi %1, %c0_i32 : i32
    %c0_i32_0 = arith.constant 0 : i32
    %c0_i32_1 = arith.constant 0 : i32
    %c0_i32_2 = arith.constant 0 : i32
    return %arg0, %2, %c0_i32_0, %c0_i32_1 : i32, i32, i32, i32
  }
  func.func @transform_4(%arg0: i32, %arg1: i32) -> (i32, i32, i32, i32) {
    %c8_i32 = arith.constant 8 : i32
    %0 = arith.muli %arg1, %c8_i32 : i32
    %c8_i32_0 = arith.constant 8 : i32
    %1 = arith.addi %0, %c8_i32_0 : i32
    %c15_i32 = arith.constant 15 : i32
    %2 = arith.minsi %1, %c15_i32 : i32
    %c0_i32 = arith.constant 0 : i32
    %c0_i32_1 = arith.constant 0 : i32
    %c0_i32_2 = arith.constant 0 : i32
    return %arg0, %2, %c0_i32, %c0_i32_1 : i32, i32, i32, i32
  }
  func.func @transform_5(%arg0: i32, %arg1: i32) -> (i32, i32, i32, i32) {
    %c8_i32 = arith.constant 8 : i32
    %0 = arith.muli %arg1, %c8_i32 : i32
    %c1_i32 = arith.constant 1 : i32
    %1 = arith.subi %0, %c1_i32 : i32
    %c0_i32 = arith.constant 0 : i32
    %2 = arith.maxsi %1, %c0_i32 : i32
    %c0_i32_0 = arith.constant 0 : i32
    %c0_i32_1 = arith.constant 0 : i32
    %c0_i32_2 = arith.constant 0 : i32
    return %arg0, %2, %c0_i32_0, %c0_i32_1 : i32, i32, i32, i32
  }
  func.func @transform_6(%arg0: i32, %arg1: i32) -> (i32, i32, i32, i32) {
    %c8_i32 = arith.constant 8 : i32
    %0 = arith.muli %arg1, %c8_i32 : i32
    %c8_i32_0 = arith.constant 8 : i32
    %1 = arith.addi %0, %c8_i32_0 : i32
    %c15_i32 = arith.constant 15 : i32
    %2 = arith.minsi %1, %c15_i32 : i32
    %c0_i32 = arith.constant 0 : i32
    %c0_i32_1 = arith.constant 0 : i32
    %c0_i32_2 = arith.constant 0 : i32
    return %arg0, %2, %c0_i32, %c0_i32_1 : i32, i32, i32, i32
  }
  func.func @transform_7(%arg0: i32, %arg1: i32) -> (i32, i32, i32) {
    %c0_i32 = arith.constant 0 : i32
    %c0_i32_0 = arith.constant 0 : i32
    %c0_i32_1 = arith.constant 0 : i32
    %c0_i32_2 = arith.constant 0 : i32
    return %c0_i32, %c0_i32_0, %c0_i32_1 : i32, i32, i32
  }
  func.func @transform_8(%arg0: i32, %arg1: i32) -> (i32, i32) {
    %c0_i32 = arith.constant 0 : i32
    %c0_i32_0 = arith.constant 0 : i32
    %c0_i32_1 = arith.constant 0 : i32
    return %c0_i32, %c0_i32_0 : i32, i32
  }
  func.func @transform_9(%arg0: i32, %arg1: i32) -> (i32, i32) {
    %c0_i32 = arith.constant 0 : i32
    %c0_i32_0 = arith.constant 0 : i32
    %c0_i32_1 = arith.constant 0 : i32
    return %c0_i32, %c0_i32_0 : i32, i32
  }
  func.func @transform_10(%arg0: i32, %arg1: i32) -> (i32, i32, i32, i32) {
    %c0_i32 = arith.constant 0 : i32
    %c0_i32_0 = arith.constant 0 : i32
    %c0_i32_1 = arith.constant 0 : i32
    return %arg0, %arg1, %c0_i32, %c0_i32_0 : i32, i32, i32, i32
  }
}

</mosaic_0001>

<bundles_post_ra>
// kernel: tpu_custom_call.1
= control target key start
LH: loop header
LB: loop body
LE: loop exit
PB: predicated region body
PF: predicated region fallthrough
CT: control target
= control target key end

     0   :  { %s3105_s0 = inlined_call_operand.vmem [shape: f32[2], index: 0, kind: input, shape index: {}]   ;;  %s3106_s1 = inlined_call_operand.vmem [shape: f32[2,16,16,8], index: 1, kind: input, shape index: {}]   ;;  %s3107_s2 = inlined_call_operand.vmem [shape: f32[2,32,16,16], index: 2, kind: input, shape index: {}]   ;;  %s3108_s3 = inlined_call_operand.vmem [shape: f32[2,16,16,8], index: 3, kind: input, shape index: {}]   ;;  %s3109_s4 = inlined_call_operand.vmem [shape: f32[2,16,16,8], index: 4, kind: input, shape index: {}]   ;;  %s3110_s5 = inlined_call_operand.vmem [shape: f32[2,32,16,16], index: 5, kind: input, shape index: {}]   ;;  %s3111_s6 = inlined_call_operand.vmem [shape: f32[2,32,16,16], index: 6, kind: input, shape index: {}]   ;;  %s3112_s7 = inlined_call_operand.vmem [shape: f32[3,3,8], index: 7, kind: input, shape index: {}]   ;;  %s3113_s8 = inlined_call_operand.vmem [shape: f32[8,8], index: 8, kind: input, shape index: {}]   ;;  %s3114_s9 = inlined_call_operand.vmem [shape: f32[1,8], index: 9, kind: input, shape index: {}]   ;;  %s3115_s10 = inlined_call_operand.vmem [shape: f32[2,16,16,8], index: 10, kind: output, shape index: {}]  }
   0x1   :  { %3156 = sst [smem:[#allocation28_spill]] %s3105_s0 }
   0x2   :  { %3157 = sst [smem:[#allocation29_spill]] %s3107_s2 }
   0x3   :  { %15 = vsyncpa [#allocation3], 0  ;;  %s2042_s13 = smov 0   ;;  %s2044_s14 = smov 0  }
   0x4   :  { %s2046_s15 = smov 0   ;;  %s2048_s16 = smov 0  }
   0x5   :  { %s2050_s17 = smov 0  }
   0x6 LB: > { %3158 = sst [smem:[#allocation5_spill]] %s1978_s16  ;;  %s1784_s18 = sadd.s32 4294967295, %s1982_s17   ;;  %s1982_s17 = sphi %s2050_s17, %s21_s17   ;;  %s1978_s16 = sphi %s2048_s16, %s3246_s16   ;;  %s1974_s15 = sphi %s2046_s15, %s3248_s15   ;;  %s1970_s14 = sphi %s2044_s14, %s3244_s14   ;;  %s1966_s13 = sphi %s2042_s13, %s3247_s13  }
   0x7   : > { %s30_s19 = sadd.s32 1, %s1974_s15  ;;  %s33_s20 = sadd.s32 1, %s1978_s16 }
   0x8   : > { %p31_p0 = scmp.ge.s32.totalorder %s30_s19, 2  ;;  %p1798_p1 = scmp.ge.s32.totalorder %s1982_s17, 1 }
   0x9   : > { %p350_p2 = scmp.lt.s32.totalorder %s1982_s17, 5  ;;  %p1877_p5 = scmp.eq.s32.totalorder %s1784_s18, 0 }
   0xa   : > { %s3250_s19 = smov (%p31_p0, %s30_s19), 0  ;;  %s3252_s20 = smov (!%p31_p0, %s33_s20), %s1978_s16 }
   0xb   : > { %3159 = sst [smem:[#allocation6_spill]] %s3250_s19  ;;  %p351_p3 = pnand %p1798_p1, %p350_p2 }
   0xc   : > { %p35_p4 = scmp.ge.s32.totalorder %s3252_s20, 2  ;;  %s3160_s0 = sld [smem:[#allocation28_spill]] }
   0xd   : > { %p1873_p6 = pneg %p351_p3  ;;  %s1984_s24 = smov [#allocation2]  }
   0xe   : > { %s3254_s20 = smov (%p35_p4, %s3252_s20), 0 }
   0xf   : > { %3161 = sst [smem:[#allocation7_spill]] %s3254_s20  ;;  %p1874_p7 = pnand %p1877_p5, %p1873_p6 }
  0x10   : > { %496 = sbr.rel (%p351_p3) target bundleno = 400 (0x190), region = 60 }
  0x12   : > { %s362_s23 = sshll.u32 %s3160_s0, 4  ;;  %s363_s23 = int_to_ptr.vmem [resolvable:$true] %s362_s23 }
  0x13   : > { %1876 = dma.vmem_to_smem (!%p1874_p7), %s363_s23, 16, %s1984_s24, [#allocation3]  }
  0x15   : > { %1961 = dma.done.wait (%p1877_p5), [#allocation3], 16  }
  0x16   : > { %1963 = vsyncadd (%p1877_p5), [#allocation3], 4294967280 }
  0x17   : > { %503 = sfence }
  0x18   : > { %p611_p8 = scmp.lt.s32.totalorder %s1970_s14, 1  ;;  %s1807_s25 = sshll.u32 %s1966_s13, 4  ;;  %vm1072_vm4 = vcmask 1046528   ;;  %vm1011_vm5 = vcmask 1040384   ;;  %vm1422_vm6 = vcmask 64512  }
  0x19   : > { %p624_p9 = scmp.lt.s32.totalorder %s1807_s25, 31  ;;  %s2085_s27 = sshll.u32 %s1966_s13, 3 }
  0x1a   : > { %s3256_s14 = smov (!%p611_p8, %s1970_s14), 1  ;;  %s2088_s29 = sadd.s32 4294967295, %s2085_s27 }
  0x1b   : > { %s3258_s25 = smov (!%p624_p9, %s1807_s25), 31  ;;  %s2082_s26 = sshll.u32 %s3256_s14, 6 }
  0x1c   : > { %s1808_s28 = sshll.u32 %s3258_s25, 1  ;;  %p634_p10 = scmp.gt.s32.totalorder %s2088_s29, 0 }
  0x1d   : > { %s628_s30 = sadd.s32 %s2082_s26, %s1808_s28  ;;  %p613_p11 = scmp.lt.s32.totalorder %s2085_s27, 15 }
  0x1e   : > { %s1810_s11 = sshll.u32 %s628_s30, 3  ;;  %s3162_s2 = sld [smem:[#allocation29_spill]] }
  0x1f   : > { %s650_s22 = sadd.s32 8, %s2085_s27  ;;  %s3116_s25 = smov 120  }
  0x20   : > { %s2103_s23 = scalar_select %p634_p10, %s2088_s29, 0 }
  0x21   : > { %p2115_p13 = scmp.lt.s32.totalorder %s650_s22, 15  ;;  %s3260_s27 = smov (!%p613_p11, %s2085_s27), 15 }
  0x22   : > { %s1830_s24 = sshll.u32 %s2103_s23, 1  ;;  %s715_s30 = sld [smem:[#allocation2]] }
  0x23   : > { %p673_p12 = scmp.lt.s32.totalorder %s1830_s24, 31  ;;  %s3264_s22 = smov (!%p2115_p13, %s650_s22), 15 }
  0x24   : > { %s2096_s21 = scalar_lea.vmem %s3162_s2, %s1810_s11  ;;  %s1804_s12 = sshll.u32 %s3260_s27, 1 }
  0x25   : > { %v759_v0 = vld [vmem:[%s2096_s21 + $0xa0] sm:$0xff]  ;;  %v761_v1 = vld [vmem:[%s2096_s21 + $0xb0] sm:$0xff]  ;;  %v752_v6 = vld [vmem:[%s2096_s21 + $0x68] sm:$0xff]  ;;  %s3262_s24 = smov (!%p673_p12, %s1830_s24), 31  ;;  %s1843_s18 = sld [smem:[#allocation2 + $0x1]] }
  0x26   : > { %v751_v2 = vld [vmem:[%s2096_s21 + $0x60] sm:$0xff]  ;;  %v2105_v3 = vmax.f32 %v759_v0, %v761_v1  ;;  %v753_v4 = vld [vmem:[%s2096_s21 + $0x70] sm:$0xff]  ;;  %v754_v7 = vld [vmem:[%s2096_s21 + $0x78] sm:$0xff]  ;;  %s1831_s11 = sshll.u32 %s3262_s24, 1  ;;  %s3164_s0 = smov 120  }
  0x27   : > { %v2108_v5 = vmax.f32 %v751_v2, %v753_v4  ;;  %v763_v8 = vld [vmem:[%s2096_s21 + $0xc0] sm:$0xff]  ;;  %v765_v9 = vld [vmem:[%s2096_s21 + $0xd0] sm:$0xff]  ;;  %v2123_v10 = vmax.f32 %v752_v6, %v754_v7  ;;  %v756_v14 = vld [vmem:[%s2096_s21 + $0x88] sm:$0xff]  ;;  %s677_s2 = sadd.s32 %s1831_s11, %s2082_s26  ;;  %s1986_s27 = smov 0.0  }
  0x28   : > { %823 = vrot.lane.b32.xlu1 %v2105_v3, %s3116_s25  ;;  %v755_v11 = vld [vmem:[%s2096_s21 + $0x80] sm:$0xff]  ;;  %v757_v12 = vld [vmem:[%s2096_s21 + $0x90] sm:$0xff]  ;;  %v2132_v13 = vmax.f32 %v763_v8, %v765_v9  ;;  %v758_v15 = vld [vmem:[%s2096_s21 + $0x98] sm:$0xff]  ;;  %s2159_s20 = smax.f32 %s1986_s27, %s715_s30  ;;  %p1813_p0 = scmp.lt.s32.totalorder %s2088_s29, 15 }
  0x29   : > { %815 = vrot.lane.b32.xlu0 %v2108_v5, %s3116_s25  ;;  %817 = vrot.lane.b32.xlu2 %v2123_v10, %s3116_s25  ;;  %v2140_v16 = vmax.f32 %v755_v11, %v757_v12  ;;  %v2142_v17 = vmax.f32 %v756_v14, %v758_v15  ;;  %s2145_s25 = sshll.u32 %s3256_s14, 5  ;;  %v764_v18 = vld [vmem:[%s2096_s21 + $0xc8] sm:$0xff]  ;;  %v766_v19 = vld [vmem:[%s2096_s21 + $0xd8] sm:$0xff]  ;;  %s1833_s14 = sshll.u32 %s677_s2, 3 }
  0x2a   : > { %s2155_s24 = sadd.s32 %s2145_s25, %s1804_s12  ;;  %v760_v20 = vld [vmem:[%s2096_s21 + $0xa8] sm:$0xff]  ;;  %v762_v21 = vld [vmem:[%s2096_s21 + $0xb8] sm:$0xff]  ;;  %v2163_v22 = vmax.f32 %v764_v18, %v766_v19  ;;  %v767_v23 = vld [vmem:[%s2096_s21 + $0xe0] sm:$0xff]  ;;  %s2176_s16 = scalar_lea.vmem %s3110_s5, %s1833_s14 }
  0x2b   : > { %v769_v24 = vld [vmem:[%s2096_s21 + $0xf0] sm:$0xff]  ;;  %s2167_s11 = smax.f32 %s1986_s27, %s1843_s18  ;;  %v2169_v25 = vmax.f32 %v760_v20, %v762_v21  ;;  %v937_v27 = vld [vmem:[%s2176_s16] sm:$0xff]  ;;  %s3266_s23 = smov (!%p1813_p0, %s2103_s23), 15  ;;  %v768_v30 = vld [vmem:[%s2096_s21 + $0xe8] sm:$0xff] }
  0x2c   : > { %s719_s30 = sadd.f32 %s2167_s11, %s2159_s20  ;;  %v2179_v26 = vmax.f32 %v767_v23, %v769_v24  ;;  %v939_v28 = vld [vmem:[%s2176_s16 + $0x10] sm:$0xff]  ;;  %v770_v31 = vld [vmem:[%s2096_s21 + $0xf8] sm:$0xff]  ;;  %s1835_s19 = sshll.u32 %s3264_s22, 1  ;;  %v739_v33 = vld [vmem:[%s2096_s21] sm:$0xff] }
  0x2d   : > { %s1818_s29 = sshll.u32 %s3266_s23, 1  ;;  %v2193_v32 = vmax.f32 %v937_v27, %v939_v28  ;;  %v741_v34 = vld [vmem:[%s2096_s21 + $0x10] sm:$0xff]  ;;  %v2200_v35 = vmax.f32 %v768_v30, %v770_v31  ;;  %p692_p1 = scmp.lt.s32.totalorder %s1835_s19, 31  ;;  %v747_v38 = vld [vmem:[%s2096_s21 + $0x40] sm:$0xff]  ;;  %v938_v47 = vld [vmem:[%s2176_s16 + $0x8] sm:$0xff] }
  0x2e   : > { %s720_s2 = sadd.f32 0.0001, %s719_s30  ;;  %s2198_s18 = sadd.s32 %s1818_s29, %s2145_s25  ;;  %v2202_v36 = vmax.f32 %v739_v33, %v741_v34  ;;  %v749_v39 = vld [vmem:[%s2096_s21 + $0x50] sm:$0xff]  ;;  %v743_v41 = vld [vmem:[%s2096_s21 + $0x20] sm:$0xff]  ;;  %v940_v48 = vld [vmem:[%s2176_s16 + $0x18] sm:$0xff] }
  0x2f   : > { %s3268_s22 = smov (!%p2115_p13, %s3264_s22), 15  ;;  %s3270_s19 = smov (!%p692_p1, %s1835_s19), 31  ;;  %v745_v42 = vld [vmem:[%s2096_s21 + $0x30] sm:$0xff]  ;;  %v2221_v46 = vmax.f32 %v747_v38, %v749_v39  ;;  %v2227_v52 = vmax.f32 %v938_v47, %v940_v48  ;;  %v744_v54 = vld [vmem:[%s2096_s21 + $0x28] sm:$0xff]  ;;  %v746_v55 = vld [vmem:[%s2096_s21 + $0x38] sm:$0xff] }
  0x30   : > { %827 = vrot.lane.b32.xlu1 %v2132_v13, %s3164_s0  ;;  %v721_v29 = vstv %s720_s2  ;;  %s2215_s23 = sshll.u32 %s3268_s22, 1  ;;  %v2225_v49 = vmax.f32 %v743_v41, %v745_v42  ;;  %s1836_s22 = sshll.u32 %s3270_s19, 1  ;;  %v740_v57 = vld [vmem:[%s2096_s21 + $0x8] sm:$0xff]  ;;  %v742_v58 = vld [vmem:[%s2096_s21 + $0x18] sm:$0xff]  ;;  %v2240_v60 = vmax.f32 %v744_v54, %v746_v55 }
  0x31   : > { %819 = vrot.lane.b32.xlu0 %v2140_v16, %s3164_s0  ;;  %821 = vrot.lane.b32.xlu2 %v2142_v17, %s3164_s0  ;;  %1923 = vrcp.f32 %v721_v29  ;;  %v733_v43 = vand.u32 2147483648, %v721_v29  ;;  %vm727_vm0 = vweird.f32 %v721_v29  ;;  %v731_v45 = vand.u32 2147483647, %v721_v29  ;;  %s659_s28 = sadd.s32 %s2215_s23, %s2145_s25  ;;  %s696_s27 = sadd.s32 %s1836_s22, %s2082_s26  ;;  %v748_v61 = vld [vmem:[%s2096_s21 + $0x48] sm:$0xff]  ;;  %v750_v62 = vld [vmem:[%s2096_s21 + $0x58] sm:$0xff] }
  0x32   : > { %s1838_s16 = sshll.u32 %s696_s27, 3  ;;  %v2244_v63 = vmax.f32 %v740_v57, %v742_v58  ;;  %v2249_v0 = vmax.f32 %v748_v61, %v750_v62  ;;  %s1806_s12 = sshll.u32 %s2155_s24, 3  ;;  %v1133_v30 = vld [vmem:[%s3112_s7] sm:$0x7]  ;;  %v1134_v33 = vld [vmem:[%s3112_s7 + $0x4] sm:$0x7] }
  0x33   : > { %v734_v51 = vor.u32 1.1754944e-38, %v733_v43  ;;  %vm732_vm3 = vcmp.eq.f32.partialorder %v731_v45, 8.507059e+37  ;;  %s698_s30 = scalar_lea.vmem %s3111_s6, %s1838_s16  ;;  %s2273_s27 = scalar_lea.vmem %s3106_s1, %s1806_s12  ;;  %v1135_v34 = vld [vmem:[%s3112_s7 + $0x8] sm:$0x7]  ;;  %v2313_v41 = vperm.slane %v1133_v30, 1  ;;  %v2321_v47 = vperm.slane %v1134_v33, 1 }
  0x34   : > { %v962_v1 = vld [vmem:[%s698_s30 + $0x8] sm:$0xff]  ;;  %v964_v2 = vld [vmem:[%s698_s30 + $0x18] sm:$0xff]  ;;  %v961_v4 = vld [vmem:[%s698_s30] sm:$0xff]  ;;  %p981_p2 = scmp.eq.s32.totalorder %s1966_s13, 0  ;;  %v2323_v48 = vperm.slane %v1133_v30, 2  ;;  %v2339_v58 = vperm.slane %v1134_v33, 0  ;;  %s3056_s26 = scalar_lea.vmem %s3115_s10, %s1806_s12 }
  0x35   : > { %v963_v6 = vld [vmem:[%s698_s30 + $0x10] sm:$0xff]  ;;  %v2257_v7 = vmax.f32 %v962_v1, %v964_v2  ;;  %v874_v15 = vld [vmem:[%s2273_s27 + $0x38] sm:$0xff]  ;;  %v876_v20 = vld [vmem:[%s2273_s27 + $0x48] sm:$0xff]  ;;  %v2343_v61 = vperm.slane %v1133_v30, 0  ;;  %v2345_v62 = vperm.slane %v1135_v34, 0  ;;  %p986_p3 = scmp.eq.s32.totalorder %s1966_s13, 1 }
  0x36   : > { %v2259_v8 = vmax.f32 %v961_v4, %v963_v6  ;;  %v877_v28 = vld [vmem:[%s2273_s27 + $0x50] sm:$0xff]  ;;  %v875_v43 = vld [vmem:[%s2273_s27 + $0x40] sm:$0xff]  ;;  %v878_v55 = vld [vmem:[%s2273_s27 + $0x58] sm:$0xff] }
  0x37   : > { %v1924_v37 = vpop.eup %1923  ;;  %3165 = vst [vmem:[#allocation8_spill] sm:$0xff] %v2257_v7  ;;  %v881_v38 = vld [vmem:[%s2273_s27 + $0x70] sm:$0xff]  ;;  %v867_v57 = vld [vmem:[%s2273_s27] sm:$0xff]  ;;  %v882_v4 = vld [vmem:[%s2273_s27 + $0x78] sm:$0xff] }
  0x38   : > { %829 = vrot.lane.b32.xlu1 %v2163_v22, %s3164_s0  ;;  %v723_v40 = vmul.f32 %v1924_v37, %v721_v29  ;;  %vm728_vm1 = vweird.f32 %v1924_v37  ;;  %3166 = vst [vmem:[#allocation9_spill] sm:$0xff] %v2259_v8  ;;  %v873_v29 = vld [vmem:[%s2273_s27 + $0x30] sm:$0xff] }
  0x39   : > { %825 = vrot.lane.b32.xlu0 %v2169_v25, %s3164_s0  ;;  %831 = vrot.lane.b32.xlu2 %v2179_v26, %s3164_s0  ;;  %vm729_vm2 = vmor %vm727_vm0, %vm728_vm1 }
  0x3a   : > { %v724_v44 = vsub.f32 1.0, %v723_v40 }
  0x3c   : > { %v725_v50 = vmul.f32 %v1924_v37, %v724_v44  ;;  %v880_v44 = vld [vmem:[%s2273_s27 + $0x68] sm:$0xff] }
  0x3e   : > { %v726_v53 = vadd.f32 %v1924_v37, %v725_v50  ;;  %v2325_v50 = vperm.slane %v1135_v34, 1 }
  0x40   : > { %945 = vrot.lane.b32.xlu1 %v2193_v32, %s3164_s0  ;;  %v730_v56 = vsel %vm729_vm2, %v1924_v37, %v726_v53  ;;  %v879_v37 = vld [vmem:[%s2273_s27 + $0x60] sm:$0xff] }
  0x41   : > { %833 = vrot.lane.b32.xlu0 %v2200_v35, %s3164_s0  ;;  %803 = vrot.lane.b32.xlu2 %v2202_v36, %s3164_s0  ;;  %v735_v59 = vsel %vm732_vm3, %v734_v51, %v730_v56 }
  0x42   : > { %1867 = vpush %v735_v59  ;;  %v2341_v59 = vperm.slane %v1134_v33, 2 }
  0x48   : > { %811 = vrot.lane.b32.xlu1 %v2221_v46, %s3164_s0 }
  0x49   : > { %807 = vrot.lane.b32.xlu0 %v2225_v49, %s3164_s0  ;;  %947 = vrot.lane.b32.xlu2 %v2227_v52, %s3164_s0 }
  0x50   : > { %809 = vrot.lane.b32.xlu1 %v2240_v60, %s3164_s0 }
  0x51   : > { %805 = vrot.lane.b32.xlu0 %v2244_v63, %s3164_s0  ;;  %813 = vrot.lane.b32.xlu2 %v2249_v0, %s3164_s0 }
  0x58   : > { %971 = vrot.lane.b32.xlu1 %v2257_v7, %s3164_s0 }
  0x59   : > { %969 = vrot.lane.b32.xlu0 %v2259_v8, %s3164_s0  ;;  %s2555_s0 = scalar_select %p986_p3, 0.0, 1.0 }
  0x73   : > { %s1868_s21 = spop %1867 }
  0x74   : > { %s737_s2 = smul.f32 %s1868_s21, %s2159_s20 }
  0x75   : > { %s738_s19 = smul.f32 %s1868_s21, %s2167_s11  ;;  %s1820_s11 = sshll.u32 %s2198_s18, 3 }
  0x76   : > { %v2276_v12 = vstv %s737_s2  ;;  %s644_s2 = scalar_lea.vmem %s3108_s3, %s1820_s11 }
  0x77   : > { %v2278_v14 = vstv %s738_s19  ;;  %v891_v18 = vmul.f32 %v2276_v12, %v874_v15  ;;  %v893_v24 = vmul.f32 %v2276_v12, %v876_v20  ;;  %v2307_v39 = vmul.f32 %v2276_v12, %v877_v28  ;;  %v934_v6 = vld [vmem:[%s644_s2 + $0x8] sm:$0xff]  ;;  %s2362_s19 = scalar_select %p981_p2, 0.0, 1.0  ;;  %v933_v15 = vld [vmem:[%s644_s2] sm:$0xff] }
  0x78   : > { %v2310_v40 = vmul.f32 %v2276_v12, %v873_v29  ;;  %v2328_v51 = vmul.f32 %v2276_v12, %v879_v37  ;;  %v898_v54 = vmul.f32 %v2276_v12, %v881_v38  ;;  %v2349_v1 = vmul.f32 %v2276_v12, %v875_v43 }
  0x79   : > { %v2352_v2 = vmul.f32 %v2276_v12, %v880_v44  ;;  %v2391_v37 = vmul.f32 %v2276_v12, %v882_v4  ;;  %v2394_v38 = vmul.f32 %v934_v6, %v2276_v12  ;;  %v869_v44 = vld [vmem:[%s2273_s27 + $0x10] sm:$0xff]  ;;  %v872_v4 = vld [vmem:[%s2273_s27 + $0x28] sm:$0xff] }
  0x83   : > { %v818_v9 = vpop.permute.xlu2 %817 }
  0x84   : > { %v858_v11 = vmax.f32 %v2123_v10, %v818_v9  ;;  %v2355_v9 = vperm.slane %v1135_v34, 2 }
  0x86   : > { %v908_v19 = vmul.f32 %v2278_v14, %v858_v11  ;;  %v2358_v11 = vmul.f32 %v2276_v12, %v878_v55  ;;  %v870_v55 = vld [vmem:[%s2273_s27 + $0x18] sm:$0xff] }
  0x88   : > { %v2286_v10 = vadd.f32 %v908_v19, %v891_v18  ;;  %v1417_v18 = vld [vmem:[%s3113_s8] sm:$0xff] }
  0x89   : > { %1865 = vmatpush.msra.mxu2 %v1417_v18  ;;  %1866 = vmatpush.msra.mxu3 %v1417_v18 }
  0x8a   : > { %3167 = vst [vmem:[#allocation10_spill] sm:$0xff] %v2286_v10  ;;  %v2374_v20 = vmul.f32 %v2313_v41, %v2286_v10  ;;  %1486 = vmatpush.msra.mxu0 %v1417_v18  ;;  %1864 = vmatpush.msra.mxu1 %v1417_v18 }
  0x8b   : > { %v822_v21 = vpop.permute.xlu2 %821 }
  0x8c   : > { %v860_v23 = vmax.f32 %v2142_v17, %v822_v21  ;;  %v3121_v17 = vrot.slane %v2286_v10, 1 }
  0x8e   : > { %v910_v27 = vmul.f32 %v2278_v14, %v860_v23  ;;  %v2336_v56 = vsel %vm1072_vm4, %v3121_v17, 0.0 }
  0x8f   : > { %3169 = vst [vmem:[#allocation12_spill] sm:$0xff] %v2336_v56  ;;  %v2378_v21 = vmul.f32 %v2323_v48, %v2336_v56  ;;  %v3175_v56 = vrot.slane %v2286_v10, 1 }
  0x90   : > { %v2294_v31 = vadd.f32 %v910_v27, %v893_v24  ;;  %v884_v27 = vmul.f32 %v2276_v12, %v867_v57 }
  0x92   : > { %3168 = vst [vmem:[#allocation11_spill] sm:$0xff] %v2294_v31  ;;  %v3119_v45 = vrot.slane %v2294_v31, 1  ;;  %v2386_v29 = vmul.f32 %v2321_v47, %v2294_v31 }
  0x93   : > { %v832_v42 = vpop.permute.xlu2 %831 }
  0x94   : > { %v865_v53 = vmax.f32 %v2179_v26, %v832_v42  ;;  %v2370_v19 = vsel %vm1072_vm4, %v3119_v45, 0.0 }
  0x95   : > { %3170 = vst [vmem:[#allocation13_spill] sm:$0xff] %v2370_v19 }
  0x96   : > { %v915_v26 = vmul.f32 %v2278_v14, %v865_v53  ;;  %v2404_v53 = vmul.f32 %v2341_v59, %v2370_v19 }
  0x98   : > { %v2380_v24 = vadd.f32 %v915_v26, %v898_v54 }
  0x9a   : > { %v824_v23 = vpop.permute.xlu1 %823  ;;  %v3120_v43 = vrot.slane %v2380_v24, 7  ;;  %v1348_v6 = vmul.f32 %v2325_v50, %v2380_v24 }
  0x9b   : > { %v861_v30 = vmax.f32 %v2105_v3, %v824_v23  ;;  %v816_v34 = vpop.permute.xlu0 %815  ;;  %v2399_v3 = vmul.f32 %v933_v15, %v2276_v12  ;;  %v804_v57 = vpop.permute.xlu2 %803  ;;  %v2416_v23 = vmul.f32 %v2276_v12, %v869_v44 }
  0x9c   : > { %v857_v42 = vmax.f32 %v2108_v5, %v816_v34  ;;  %v871_v5 = vld [vmem:[%s2273_s27 + $0x20] sm:$0xff]  ;;  %v851_v18 = vmax.f32 %v2202_v36, %v804_v57  ;;  %v868_v34 = vld [vmem:[%s2273_s27 + $0x8] sm:$0xff]  ;;  %v2435_v36 = vsel %vm1011_vm5, 0.0, %v3120_v43  ;;  %v2442_v57 = vmul.f32 %v2276_v12, %v870_v55  ;;  %s1827_s27 = sshll.u32 %s659_s28, 3 }
  0x9d   : > { %v911_v54 = vmul.f32 %v2278_v14, %v861_v30  ;;  %v2419_v30 = vmul.f32 %v2276_v12, %v872_v4  ;;  %v2427_v45 = vmul.f32 %v2276_v12, %v871_v5  ;;  %v2430_v26 = vmul.f32 %v2276_v12, %v868_v34  ;;  %3171 = vst [vmem:[#allocation14_spill] sm:$0xff] %v2435_v36  ;;  %s2474_s28 = scalar_lea.vmem %s3109_s4, %s1827_s27 }
  0x9e   : > { %v907_v15 = vmul.f32 %v2278_v14, %v857_v42  ;;  %v901_v44 = vmul.f32 %v2278_v14, %v851_v18 }
  0x9f   : > { %v2424_v33 = vadd.f32 %v911_v54, %v2307_v39  ;;  %v1331_v39 = vmul.f32 %v2345_v62, %v2435_v36 }
  0xa0   : > { %v2438_v42 = vadd.f32 %v907_v15, %v2310_v40  ;;  %v2457_v18 = vadd.f32 %v901_v44, %v884_v27  ;;  %v3177_v44 = vrot.slane %v2286_v10, 7 }
  0xa1   : > { %v3123_v54 = vrot.slane %v2424_v33, 7  ;;  %v1344_v5 = vmul.f32 %v2325_v50, %v2424_v33  ;;  %v2455_v40 = vmul.f32 %v2313_v41, %v2424_v33  ;;  %v2469_v36 = vadd.f32 %v1348_v6, %v1331_v39 }
  0xa2   : > { %3172 = vst [vmem:[#allocation15_spill] sm:$0xff] %v2438_v42  ;;  %v828_v15 = vpop.permute.xlu1 %827  ;;  %v1024_v55 = vrot.slane %v2438_v42, 7  ;;  %v1085_v34 = vrot.slane %v2438_v42, 1  ;;  %v1245_v43 = vmul.f32 %v2313_v41, %v2438_v42  ;;  %v2478_v27 = vmul.f32 %v2321_v47, %v2424_v33 }
  0xa3   : > { %3173 = vst [vmem:[#allocation16_spill] sm:$0xff] %v2457_v18  ;;  %v863_v28 = vmax.f32 %v2132_v13, %v828_v15  ;;  %v820_v4 = vpop.permute.xlu0 %819  ;;  %v2467_v17 = vsel %vm1011_vm5, 0.0, %v3123_v54  ;;  %v948_v39 = vpop.permute.xlu2 %947 }
  0xa4   : > { %v859_v13 = vmax.f32 %v2140_v16, %v820_v4  ;;  %v2484_v54 = vsel %vm1011_vm5, 0.0, %v1024_v55  ;;  %v2490_v42 = vsel %vm1072_vm4, %v1085_v34, %v3175_v56  ;;  %v1327_v16 = vmul.f32 %v2345_v62, %v2467_v17  ;;  %v957_v56 = vld [vmem:[%s2474_s28] sm:$0xff] }
  0xa5   : > { %3174 = vst [vmem:[#allocation17_spill] sm:$0xff] %v2484_v54  ;;  %v913_v6 = vmul.f32 %v2278_v14, %v863_v28  ;;  %v1228_v8 = vmul.f32 %v2343_v61, %v2484_v54  ;;  %v952_v15 = vmax.f32 %v2227_v52, %v948_v39  ;;  %v1278_v28 = vmul.f32 %v2323_v48, %v2490_v42 }
  0xa6   : > { %3176 = vst [vmem:[#allocation18_spill] sm:$0xff] %v2490_v42  ;;  %v909_v4 = vmul.f32 %v2278_v14, %v859_v13  ;;  %v2503_v18 = vsel %vm1011_vm5, %v1024_v55, %v3177_v44  ;;  %v2509_v19 = vadd.f32 %v1344_v5, %v1327_v16  ;;  %v1232_v10 = vmul.f32 %v2343_v61, %v2467_v17 }
  0xa7   : > { %3178 = vst [vmem:[#allocation19_spill] sm:$0xff] %v2503_v18  ;;  %v2507_v34 = vadd.f32 %v913_v6, %v2328_v51  ;;  %v1261_v54 = vadd.f32 %v1245_v43, %v1228_v8  ;;  %v1229_v13 = vmul.f32 %v2343_v61, %v2503_v18  ;;  %v954_v39 = vmul.f32 %v952_v15, %v2278_v14 }
  0xa8   : > { %v2514_v52 = vadd.f32 %v909_v4, %v2349_v1  ;;  %v2521_v55 = vmul.f32 %v957_v56, %v2276_v12 }
  0xa9   : > { %v1294_v51 = vadd.f32 %v1278_v28, %v1261_v54  ;;  %v1262_v8 = vadd.f32 %v2374_v20, %v1229_v13  ;;  %v3139_v43 = vrot.slane %v2507_v34, 7  ;;  %v1094_v5 = vrot.slane %v2507_v34, 1 }
  0xaa   : > { %3179 = vst [vmem:[#allocation20_spill] sm:$0xff] %v2521_v55  ;;  %v830_v1 = vpop.permute.xlu1 %829  ;;  %v956_v44 = vadd.f32 %v954_v39, %v2394_v38  ;;  %v1027_v15 = vrot.slane %v2514_v52, 7  ;;  %v1088_v6 = vrot.slane %v2514_v52, 1  ;;  %v1162_v16 = vmul.f32 %v2321_v47, %v2514_v52 }
  0xab   : > { %v864_v4 = vmax.f32 %v2163_v22, %v830_v1  ;;  %v826_v54 = vpop.permute.xlu0 %825  ;;  %v1295_v20 = vadd.f32 %v2378_v21, %v1262_v8  ;;  %v2536_v28 = vsel %vm1011_vm5, 0.0, %v3139_v43  ;;  %v1166_v38 = vmul.f32 %v2321_v47, %v2507_v34  ;;  %v814_v1 = vpop.permute.xlu2 %813 }
  0xac   : > { %v862_v56 = vmax.f32 %v2169_v25, %v826_v54  ;;  %v3180_v13 = vstv %s2362_s19  ;;  %v2546_v18 = vsel %vm1011_vm5, 0.0, %v1027_v15  ;;  %v3182_v22 = vrot.slane %v2294_v31, 1 }
  0xad   : > { %v2543_v39 = vmul.f32 %v3180_v13, %v956_v44  ;;  %v914_v8 = vmul.f32 %v2278_v14, %v864_v4  ;;  %v1145_v25 = vmul.f32 %v2339_v58, %v2546_v18  ;;  %v3183_v54 = vrot.slane %v2294_v31, 7 }
  0xae   : > { %v2551_v21 = vsel %vm1072_vm4, %v1088_v6, %v3182_v22  ;;  %v912_v6 = vmul.f32 %v2278_v14, %v862_v56  ;;  %v856_v55 = vmax.f32 %v2249_v0, %v814_v1  ;;  %v1149_v56 = vmul.f32 %v2339_v58, %v2536_v28 }
  0xaf   : > { %3181 = vst [vmem:[#allocation21_spill] sm:$0xff] %v2543_v39  ;;  %v1195_v44 = vmul.f32 %v2341_v59, %v2551_v21  ;;  %v2565_v13 = vsel %vm1011_vm5, %v1027_v15, %v3183_v54  ;;  %v2572_v4 = vmul.f32 %v2313_v41, %v2543_v39  ;;  %v2575_v42 = vadd.f32 %v914_v8, %v2352_v2 }
  0xb0   : > { %3184 = vst [vmem:[#allocation22_spill] sm:$0xff] %v2565_v13  ;;  %v1178_v7 = vadd.f32 %v1162_v16, %v1145_v25  ;;  %v1146_v15 = vmul.f32 %v2339_v58, %v2565_v13  ;;  %v2581_v54 = vadd.f32 %v912_v6, %v2358_v11  ;;  %v1265_v22 = vadd.f32 %v2455_v40, %v1232_v10 }
  0xb1   : > { %3185 = vst [vmem:[#allocation23_spill] sm:$0xff] %v2572_v4  ;;  %v906_v2 = vmul.f32 %v2278_v14, %v856_v55  ;;  %v3188_v4 = vrot.slane %v2424_v33, 7 }
  0xb2   : > { %3186 = vst [vmem:[#allocation24_spill] sm:$0xff] %v2575_v42  ;;  %v1211_v8 = vadd.f32 %v1195_v44, %v1178_v7  ;;  %v1179_v0 = vadd.f32 %v2386_v29, %v1146_v15  ;;  %v946_v16 = vpop.permute.xlu1 %945  ;;  %v1092_v1 = vrot.slane %v2581_v54, 1  ;;  %v1031_v11 = vrot.slane %v2581_v54, 7 }
  0xb3   : > { %v1345_v25 = vmul.f32 %v2325_v50, %v2581_v54  ;;  %v834_v10 = vpop.permute.xlu0 %833  ;;  %v951_v40 = vmax.f32 %v2193_v32, %v946_v16  ;;  %v2597_v43 = vadd.f32 %v906_v2, %v2419_v30  ;;  %v3187_v44 = vrot.slane %v2424_v33, 1  ;;  %v3210_v30 = vld [vmem:[#allocation17_spill] sm:$0xff] }
  0xb4   : > { %v1310_v7 = vadd.f32 %v1294_v51, %v1211_v8  ;;  %v1212_v29 = vadd.f32 %v2404_v53, %v1179_v0  ;;  %v866_v55 = vmax.f32 %v2200_v35, %v834_v10  ;;  %v2607_v39 = vsel %vm1011_vm5, %v3188_v4, %v1031_v11  ;;  %v958_v51 = vld [vmem:[%s2474_s28 + $0x8] sm:$0xff] }
  0xb5   : > { %v1093_v15 = vsel %vm1072_vm4, %v3187_v44, %v1092_v1  ;;  %v2610_v6 = vsel %vm1072_vm4, %v1092_v1, 0.0  ;;  %v953_v32 = vmul.f32 %v951_v40, %v2278_v14  ;;  %v1328_v33 = vmul.f32 %v2345_v62, %v2607_v39 }
  0xb6   : > { %v1377_v53 = vmul.f32 %v2355_v9, %v1093_v15  ;;  %v1311_v35 = vadd.f32 %v1295_v20, %v1212_v29  ;;  %v916_v2 = vmul.f32 %v2278_v14, %v866_v55  ;;  %v1378_v4 = vmul.f32 %v2355_v9, %v2610_v6 }
  0xb7   : > { %v3189_v8 = vrot.slane %v2575_v42, 1  ;;  %v955_v16 = vadd.f32 %v953_v32, %v2399_v3  ;;  %v1182_v11 = vadd.f32 %v1166_v38, %v1149_v56  ;;  %v1361_v40 = vadd.f32 %v1345_v25, %v1328_v33 }
  0xb8   : > { %v1393_v1 = vadd.f32 %v1377_v53, %v2509_v19  ;;  %v2631_v10 = vadd.f32 %v916_v2, %v2391_v37  ;;  %v1282_v29 = vmul.f32 %v2323_v48, %v1093_v15  ;;  %v2635_v55 = vmul.f32 %v958_v51, %v2276_v12 }
  0xb9   : > { %v2624_v0 = vsel %vm1072_vm4, %v1094_v5, %v3189_v8  ;;  %v3190_v44 = vstv %s2362_s19  ;;  %v1147_v19 = vmul.f32 %v2339_v58, %v2467_v17  ;;  %v1394_v32 = vadd.f32 %v1378_v4, %v1361_v40 }
  0xba   : > { %v1199_v20 = vmul.f32 %v2341_v59, %v2624_v0  ;;  %v2639_v5 = vmul.f32 %v3190_v44, %v955_v16  ;;  %v1409_v8 = vadd.f32 %v1393_v1, %v1310_v7  ;;  %v1037_v38 = vrot.slane %v2631_v10, 7  ;;  %v812_v37 = vpop.permute.xlu1 %811 }
  0xbb   : > { %v1098_v56 = vrot.slane %v2631_v10, 1  ;;  %v1298_v25 = vadd.f32 %v1282_v29, %v1265_v22  ;;  %v808_v7 = vpop.permute.xlu0 %807  ;;  %v855_v2 = vmax.f32 %v2221_v46, %v812_v37  ;;  %v1410_v33 = vadd.f32 %v1394_v32, %v1311_v35 }
  0xbc   : > { %v1215_v3 = vadd.f32 %v1199_v20, %v1182_v11  ;;  %v1012_v53 = vrot.slane %v2639_v5, 7  ;;  %v1073_v12 = vrot.slane %v2639_v5, 1  ;;  %v2649_v51 = vmul.f32 %v2313_v41, %v2639_v5  ;;  %1852 = vmatmul.msk.f32.vlgmr.msra.gmra.mxu2 %vm1422_vm6, %v1409_v8 }
  0xbd   : > { %v853_v17 = vmax.f32 %v2225_v49, %v808_v7  ;;  %v3191_v16 = vrot.slane %v2380_v24, 1  ;;  %v905_v1 = vmul.f32 %v2278_v14, %v855_v2  ;;  %v1180_v20 = vadd.f32 %v2478_v27, %v1147_v19 }
  0xbe   : > { %v1314_v4 = vadd.f32 %v1298_v25, %v1215_v3  ;;  %v1197_v46 = vmul.f32 %v2341_v59, %v1093_v15  ;;  %v1230_v49 = vmul.f32 %v2343_v61, %v2546_v18  ;;  %v1247_v35 = vmul.f32 %v2313_v41, %v2514_v52 }
  0xbf   : > { %v2657_v22 = vsel %vm1072_vm4, %v3191_v16, %v1098_v56  ;;  %v903_v40 = vmul.f32 %v2278_v14, %v853_v17  ;;  %v1280_v29 = vmul.f32 %v2323_v48, %v2551_v21  ;;  %v2672_v44 = vadd.f32 %v905_v1, %v2427_v45 }
  0xc0   : > { %v1381_v11 = vmul.f32 %v2355_v9, %v2657_v22  ;;  %v1213_v3 = vadd.f32 %v1197_v46, %v1180_v20  ;;  %v1329_v27 = vmul.f32 %v2345_v62, %v2536_v28  ;;  %v1263_v19 = vadd.f32 %v1247_v35, %v1230_v49 }
  0xc1   : > { %v2678_v15 = vadd.f32 %v903_v40, %v2416_v23  ;;  %v1346_v37 = vmul.f32 %v2325_v50, %v2507_v34  ;;  %v1379_v32 = vmul.f32 %v2355_v9, %v2624_v0  ;;  %v3192_v45 = vrot.slane %v2575_v42, 7 }
  0xc2   : > { %v1397_v8 = vadd.f32 %v1381_v11, %v2469_v36  ;;  %v3193_v7 = vrot.slane %v2507_v34, 7  ;;  %v3195_v2 = vrot.slane %v2380_v24, 7  ;;  %v3196_v17 = vrot.slane %v2575_v42, 1  ;;  %v810_v1 = vpop.permute.xlu1 %809 }
  0xc3   : > { %v1296_v11 = vadd.f32 %v1280_v29, %v1263_v19  ;;  %v2702_v20 = vsel %vm1072_vm4, %v1098_v56, 0.0  ;;  %v806_v40 = vpop.permute.xlu0 %805  ;;  %v854_v49 = vmax.f32 %v2240_v60, %v810_v1  ;;  %v3145_v29 = vrot.slane %v2678_v15, 7 }
  0xc4   : > { %v1413_v25 = vadd.f32 %v1397_v8, %v1314_v4  ;;  %v2689_v36 = vsel %vm1011_vm5, %v3193_v7, %v3192_v45  ;;  %v2694_v23 = vsel %vm1011_vm5, %v3195_v2, %v1037_v38  ;;  %v2699_v16 = vsel %vm1072_vm4, %v3196_v17, 0.0  ;;  %3198 = vst [vmem:[#allocation27_spill] sm:$0xff] %v2702_v20  ;;  %1853 = vmatmul.msk.f32.gmra.mxu2 %vm1422_vm6, %v1410_v33 }
  0xc5   : > { %3194 = vst [vmem:[#allocation25_spill] sm:$0xff] %v2689_v36  ;;  %v1362_v4 = vadd.f32 %v1346_v37, %v1329_v27  ;;  %v1150_v46 = vmul.f32 %v2339_v58, %v2689_v36  ;;  %v1167_v38 = vmul.f32 %v2321_v47, %v2575_v42  ;;  %v1200_v35 = vmul.f32 %v2341_v59, %v2699_v16 }
  0xc6   : > { %3197 = vst [vmem:[#allocation26_spill] sm:$0xff] %v2699_v16  ;;  %1856 = vmatmul.msk.f32.vlgmr.msra.gmra.mxu3 %vm1422_vm6, %v1413_v25  ;;  %v852_v56 = vmax.f32 %v2244_v63, %v806_v40  ;;  %v1312_v8 = vadd.f32 %v1296_v11, %v1213_v3  ;;  %v1233_v19 = vmul.f32 %v2343_v61, %v2607_v39 }
  0xc7   : > { %v1395_v27 = vadd.f32 %v1379_v32, %v1362_v4  ;;  %v904_v60 = vmul.f32 %v2278_v14, %v854_v49  ;;  %v1183_v33 = vadd.f32 %v1167_v38, %v1150_v46  ;;  %v1250_v37 = vmul.f32 %v2313_v41, %v2581_v54 }
  0xc8   : > { %v1283_v25 = vmul.f32 %v2323_v48, %v2610_v6  ;;  %v902_v45 = vmul.f32 %v2278_v14, %v852_v56  ;;  %v1332_v63 = vmul.f32 %v2345_v62, %v2694_v23  ;;  %v1349_v3 = vmul.f32 %v2325_v50, %v2631_v10 }
  0xc9   : > { %v1411_v7 = vadd.f32 %v1395_v27, %v1312_v8  ;;  %v2728_v32 = vadd.f32 %v904_v60, %v2442_v57  ;;  %v1216_v2 = vadd.f32 %v1200_v35, %v1183_v33  ;;  %v1266_v17 = vadd.f32 %v1250_v37, %v1233_v19  ;;  %v3199_v60 = vld [vmem:[#allocation8_spill] sm:$0xff]  ;;  %v3200_v37 = vld [vmem:[#allocation13_spill] sm:$0xff] }
  0xca   : > { %v1382_v1 = vmul.f32 %v2355_v9, %v2702_v20  ;;  %v2733_v11 = vadd.f32 %v902_v45, %v2430_v26  ;;  %v1365_v4 = vadd.f32 %v1349_v3, %v1332_v63  ;;  %v1148_v46 = vmul.f32 %v2339_v58, %v2607_v39  ;;  %v972_v8 = vpop.permute.xlu1 %971  ;;  %v3201_v45 = vld [vmem:[#allocation9_spill] sm:$0xff] }
  0xcb   : > { %v1165_v40 = vmul.f32 %v2321_v47, %v2581_v54  ;;  %v1299_v49 = vadd.f32 %v1283_v25, %v1266_v17  ;;  %v1198_v57 = vmul.f32 %v2341_v59, %v2610_v6  ;;  %v1231_v38 = vmul.f32 %v2343_v61, %v2565_v13  ;;  %v970_v19 = vpop.permute.xlu0 %969 }
  0xcc   : > { %v1248_v35 = vmul.f32 %v2313_v41, %v2294_v31  ;;  %v3146_v56 = vrot.slane %v2733_v11, 1  ;;  %v1398_v27 = vadd.f32 %v1382_v1, %v1365_v4  ;;  %v976_v54 = vmax.f32 %v3199_v60, %v972_v8  ;;  %1854 = vmatmul.msk.f32.gmra.mxu2 %vm1422_vm6, %v1411_v7 }
  0xcd   : > { %v1181_v39 = vadd.f32 %v1165_v40, %v1148_v46  ;;  %v1315_v33 = vadd.f32 %v1299_v49, %v1216_v2  ;;  %v1281_v25 = vmul.f32 %v2323_v48, %v3200_v37  ;;  %v975_v63 = vmax.f32 %v3201_v45, %v970_v19  ;;  %v3204_v19 = vld [vmem:[#allocation21_spill] sm:$0xff] }
  0xce   : > { %v1264_v6 = vadd.f32 %v1248_v35, %v1231_v38  ;;  %v1330_v17 = vmul.f32 %v2345_v62, %v2689_v36  ;;  %v1347_v1 = vmul.f32 %v2325_v50, %v2575_v42  ;;  %v978_v4 = vmul.f32 %v976_v54, %v2278_v14  ;;  %v3202_v38 = vld [vmem:[#allocation16_spill] sm:$0xff] }
  0xcf   : > { %v1214_v3 = vadd.f32 %v1198_v57, %v1181_v39  ;;  %v1414_v46 = vadd.f32 %v1398_v27, %v1315_v33  ;;  %v1380_v7 = vmul.f32 %v2355_v9, %v2699_v16  ;;  %v977_v2 = vmul.f32 %v975_v63, %v2278_v14  ;;  %v3206_v33 = vld [vmem:[#allocation20_spill] sm:$0xff] }
  0xd0   : > { %v1297_v40 = vadd.f32 %v1281_v25, %v1264_v6  ;;  %v1363_v49 = vadd.f32 %v1347_v1, %v1330_v17  ;;  %v1062_v57 = vsel %vm1011_vm5, 0.0, %v1012_v53  ;;  %v3203_v35 = vrot.slane %v3202_v38, 7 }
  0xd1   : > { %v980_v27 = vadd.f32 %v978_v4, %v2635_v55  ;;  %1857 = vmatmul.msk.f32.gmra.mxu3 %vm1422_vm6, %v1414_v46  ;;  %v2773_v14 = vsel %vm1011_vm5, 0.0, %v3145_v29  ;;  %v3205_v60 = vrot.slane %v3204_v19, 1  ;;  %v979_v6 = vadd.f32 %v977_v2, %v3206_v33 }
  0xd2   : > { %v2766_v8 = vsel %vm1011_vm5, 0.0, %v3203_v35  ;;  %v1313_v39 = vadd.f32 %v1297_v40, %v1214_v3  ;;  %v1396_v25 = vadd.f32 %v1380_v7, %v1363_v49  ;;  %v3207_v55 = vrot.slane %v3202_v38, 1 }
  0xd3   : > { %v1075_v54 = vsel %vm1072_vm4, %v1073_v12, %v3205_v60  ;;  %v1079_v63 = vrot.slane %v2678_v15, 1  ;;  %v3208_v3 = vstv %s2555_s0  ;;  %v1080_v1 = vrot.slane %v2728_v32, 1 }
  0xd4   : > { %v2786_v45 = vsel %vm1072_vm4, %v3207_v55, %v3146_v56  ;;  %v2791_v17 = vmul.f32 %v3208_v3, %v980_v27  ;;  %v1137_v12 = vmul.f32 %v2339_v58, %v2766_v8  ;;  %v1154_v4 = vmul.f32 %v2321_v47, %v3202_v38  ;;  %v3212_v56 = vld [vmem:[#allocation18_spill] sm:$0xff] }
  0xd5   : > { %v3209_v46 = vmov %v3208_v3  ;;  %v1412_v7 = vadd.f32 %v1396_v25, %v1313_v39  ;;  %v1187_v2 = vmul.f32 %v2341_v59, %v2786_v45  ;;  %v1220_v49 = vmul.f32 %v2343_v61, %v1062_v57 }
  0xd6   : > { %v2800_v40 = vmul.f32 %v3209_v46, %v979_v6  ;;  %v2808_v60 = vsel %vm1072_vm4, %v1079_v63, %v1080_v1  ;;  %v1170_v33 = vadd.f32 %v1154_v4, %v1137_v12  ;;  %v1270_v6 = vmul.f32 %v2323_v48, %v1075_v54 }
  0xd7   : > { %1855 = vmatmul.msk.f32.gmra.mxu2 %vm1422_vm6, %v1412_v7  ;;  %v1253_v39 = vadd.f32 %v2649_v51, %v1220_v49  ;;  %v1319_v57 = vmul.f32 %v2345_v62, %v2773_v14  ;;  %v1336_v46 = vmul.f32 %v2325_v50, %v2678_v15  ;;  %v1369_v63 = vmul.f32 %v2355_v9, %v2808_v60 }
  0xd8   : > { %v1203_v25 = vadd.f32 %v1187_v2, %v1170_v33  ;;  %v1021_v4 = vrot.slane %v2672_v44, 7  ;;  %v1082_v35 = vrot.slane %v2672_v44, 1  ;;  %v1083_v7 = vrot.slane %v2597_v43, 1 }
  0xd9   : > { %v1286_v12 = vadd.f32 %v1270_v6, %v1253_v39  ;;  %v1352_v51 = vadd.f32 %v1336_v46, %v1319_v57  ;;  %v1158_v54 = vmul.f32 %v2321_v47, %v2672_v44  ;;  %v1224_v2 = vmul.f32 %v2343_v61, %v2773_v14 }
  0xda   : > { %v1241_v49 = vmul.f32 %v2313_v41, %v2678_v15  ;;  %v2831_v3 = vsel %vm1011_vm5, 0.0, %v1021_v4  ;;  %v2834_v39 = vsel %vm1072_vm4, %v1082_v35, %v1083_v7  ;;  %v1274_v6 = vmul.f32 %v2323_v48, %v2808_v60 }
  0xdb   : > { %v1302_v33 = vadd.f32 %v1286_v12, %v1203_v25  ;;  %v1385_v57 = vadd.f32 %v1369_v63, %v1352_v51  ;;  %v1141_v46 = vmul.f32 %v2339_v58, %v2831_v3  ;;  %v1191_v27 = vmul.f32 %v2341_v59, %v2834_v39  ;;  %v3211_v12 = vld [vmem:[#allocation15_spill] sm:$0xff] }
  0xdc   : > { %v1257_v55 = vadd.f32 %v1241_v49, %v1224_v2  ;;  %v1323_v25 = vmul.f32 %v2345_v62, %v3210_v30  ;;  %v1340_v29 = vmul.f32 %v2325_v50, %v3211_v12  ;;  %v1373_v35 = vmul.f32 %v2355_v9, %v3212_v56 }
  0xdd   : > { %v3213_v26 = vrot.slane %v3204_v19, 7  ;;  %v1401_v51 = vadd.f32 %v1385_v57, %v1302_v33  ;;  %v1174_v37 = vadd.f32 %v1158_v54, %v1141_v46  ;;  %v3214_v2 = vrot.slane %v2733_v11, 7 }
  0xde   : > { %v1290_v31 = vadd.f32 %v1274_v6, %v1257_v55  ;;  %v3215_v49 = vrot.slane %v3202_v38, 7  ;;  %v1356_v16 = vadd.f32 %v1340_v29, %v1323_v25  ;;  %v1019_v42 = vrot.slane %v2728_v32, 7  ;;  %v3220_v25 = vld [vmem:[#allocation23_spill] sm:$0xff] }
  0xdf   : > { %v1014_v63 = vsel %vm1011_vm5, %v1012_v53, %v3213_v26  ;;  %v3216_v36 = vrot.slane %v3204_v19, 1  ;;  %v3217_v5 = vrot.slane %v2733_v11, 1  ;;  %1844 = vmatmul.msk.f32.vlgmr.msra.gmra.mxu0 %vm1422_vm6, %v1401_v51  ;;  %v1207_v26 = vadd.f32 %v1191_v27, %v1174_v37 }
  0xe0   : > { %v2858_v13 = vsel %vm1011_vm5, %v3215_v49, %v3214_v2  ;;  %v2871_v55 = vsel %vm1072_vm4, %v1080_v1, 0.0  ;;  %v1155_v54 = vmul.f32 %v2321_v47, %v2733_v11  ;;  %v1389_v19 = vadd.f32 %v1373_v35, %v1356_v16 }
  0xe1   : > { %v1123_v20 = vsel %vm1072_vm4, %v3216_v36, 0.0  ;;  %v2867_v53 = vsel %vm1072_vm4, %v3217_v5, 0.0  ;;  %v1138_v29 = vmul.f32 %v2339_v58, %v2858_v13  ;;  %v3219_v36 = vrot.slane %v2678_v15, 7 }
  0xe2   : > { %3218 = vst [vmem:[#allocation8_spill] sm:$0xff] %v2867_v53  ;;  %v1188_v6 = vmul.f32 %v2341_v59, %v2867_v53  ;;  %v1221_v37 = vmul.f32 %v2343_v61, %v1014_v63  ;;  %v1306_v27 = vadd.f32 %v1290_v31, %v1207_v26  ;;  %v1271_v57 = vmul.f32 %v2323_v48, %v1123_v20 }
  0xe3   : > { %v2880_v33 = vsel %vm1011_vm5, %v3219_v36, %v1019_v42  ;;  %v1171_v1 = vadd.f32 %v1155_v54, %v1138_v29  ;;  %v1337_v16 = vmul.f32 %v2325_v50, %v2728_v32  ;;  %v1370_v42 = vmul.f32 %v2355_v9, %v2871_v55  ;;  %v3223_v36 = vld [vmem:[#allocation19_spill] sm:$0xff] }
  0xe4   : > { %v1320_v46 = vmul.f32 %v2345_v62, %v2880_v33  ;;  %v1254_v51 = vadd.f32 %v3220_v25, %v1221_v37  ;;  %v3221_v35 = vrot.slane %v2597_v43, 7  ;;  %v1405_v31 = vadd.f32 %v1389_v19, %v1306_v27 }
  0xe5   : > { %v1204_v63 = vadd.f32 %v1188_v6, %v1171_v1  ;;  %v2899_v20 = vsel %vm1072_vm4, %v1083_v7, 0.0  ;;  %v1159_v29 = vmul.f32 %v2321_v47, %v2597_v43  ;;  %v1242_v7 = vmul.f32 %v2313_v41, %v2728_v32 }
  0xe6   : > { %v2896_v2 = vsel %vm1011_vm5, %v1021_v4, %v3221_v35  ;;  %3222 = vst [vmem:[#allocation9_spill] sm:$0xff] %v2899_v20  ;;  %v1287_v5 = vadd.f32 %v1271_v57, %v1254_v51  ;;  %v1353_v26 = vadd.f32 %v1337_v16, %v1320_v46  ;;  %v1192_v54 = vmul.f32 %v2341_v59, %v2899_v20  ;;  %v3224_v57 = vld [vmem:[#allocation10_spill] sm:$0xff]  ;;  %v3225_v51 = vld [vmem:[#allocation12_spill] sm:$0xff] }
  0xe7   : > { %v1142_v49 = vmul.f32 %v2339_v58, %v2896_v2  ;;  %1848 = vmatmul.msk.f32.vlgmr.msra.gmra.mxu1 %vm1422_vm6, %v1405_v31  ;;  %v1225_v4 = vmul.f32 %v2343_v61, %v2880_v33  ;;  %v1275_v19 = vmul.f32 %v2323_v48, %v2871_v55  ;;  %v1324_v6 = vmul.f32 %v2345_v62, %v3223_v36 }
  0xe8   : > { %v1303_v37 = vadd.f32 %v1287_v5, %v1204_v63  ;;  %v1386_v27 = vadd.f32 %v1370_v42, %v1353_v26  ;;  %v1341_v46 = vmul.f32 %v2325_v50, %v3224_v57  ;;  %v1374_v16 = vmul.f32 %v2355_v9, %v3225_v51  ;;  %v3229_v5 = vld [vmem:[#allocation14_spill] sm:$0xff] }
  0xe9   : > { %v1175_v1 = vadd.f32 %v1159_v29, %v1142_v49  ;;  %v1258_v25 = vadd.f32 %v1242_v7, %v1225_v4  ;;  %v3226_v35 = vrot.slane %v2800_v40, 7  ;;  %v3227_v20 = vrot.slane %v2791_v17, 1 }
  0xea   : > { %v3228_v53 = vrot.slane %v2800_v40, 1  ;;  %v1402_v63 = vadd.f32 %v1386_v27, %v1303_v37  ;;  %v1357_v49 = vadd.f32 %v1341_v46, %v1324_v6  ;;  %v1151_v26 = vmul.f32 %v2339_v58, %v3229_v5 }
  0xeb   : > { %v1071_v31 = vsel %vm1011_vm5, 0.0, %v3226_v35  ;;  %v1208_v42 = vadd.f32 %v1192_v54, %v1175_v1  ;;  %v1291_v29 = vadd.f32 %v1275_v19, %v1258_v25  ;;  %v1168_v4 = vmul.f32 %v2321_v47, %v2380_v24 }
  0xec   : > { %v1102_v36 = vsel %vm1072_vm4, %v3228_v53, %v3227_v20  ;;  %v1201_v7 = vmul.f32 %v2341_v59, %v2657_v22  ;;  %v1234_v35 = vmul.f32 %v2343_v61, %v2536_v28  ;;  %1845 = vmatmul.msk.f32.gmra.mxu0 %vm1422_vm6, %v1402_v63  ;;  %v1390_v51 = vadd.f32 %v1374_v16, %v1357_v49 }
  0xed   : > { %v1251_v53 = vmul.f32 %v2313_v41, %v2507_v34  ;;  %v1284_v20 = vmul.f32 %v2323_v48, %v2624_v0  ;;  %v1333_v54 = vmul.f32 %v2345_v62, %v1071_v31  ;;  %v1307_v19 = vadd.f32 %v1291_v29, %v1208_v42 }
  0xee   : > { %v1184_v6 = vadd.f32 %v1168_v4, %v1151_v26  ;;  %v1350_v24 = vmul.f32 %v2325_v50, %v2800_v40  ;;  %v1383_v22 = vmul.f32 %v2355_v9, %v1102_v36  ;;  %v1139_v28 = vmul.f32 %v2339_v58, %v2773_v14 }
  0xef   : > { %v1267_v37 = vadd.f32 %v1251_v53, %v1234_v35  ;;  %v1156_v27 = vmul.f32 %v2321_v47, %v2678_v15  ;;  %v1189_v34 = vmul.f32 %v2341_v59, %v2808_v60  ;;  %v1406_v0 = vadd.f32 %v1390_v51, %v1307_v19 }
  0xf0   : > { %v1217_v1 = vadd.f32 %v1201_v7, %v1184_v6  ;;  %v1366_v46 = vadd.f32 %v1350_v24, %v1333_v54  ;;  %v1222_v25 = vmul.f32 %v2343_v61, %v2766_v8  ;;  %v1239_v36 = vmul.f32 %v2313_v41, %v3202_v38 }
  0xf1   : > { %v1300_v16 = vadd.f32 %v1284_v20, %v1267_v37  ;;  %v1172_v31 = vadd.f32 %v1156_v27, %v1139_v28  ;;  %v1272_v14 = vmul.f32 %v2323_v48, %v2786_v45  ;;  %1849 = vmatmul.msk.f32.gmra.mxu1 %vm1422_vm6, %v1406_v0  ;;  %v1321_v60 = vmul.f32 %v2345_v62, %v2831_v3 }
  0xf2   : > { %v1399_v15 = vadd.f32 %v1383_v22, %v1366_v46  ;;  %v1338_v51 = vmul.f32 %v2325_v50, %v2672_v44  ;;  %v1371_v8 = vmul.f32 %v2355_v9, %v2834_v39  ;;  %v1255_v49 = vadd.f32 %v1239_v36, %v1222_v25  ;;  %v3235_v25 = vld [vmem:[#allocation24_spill] sm:$0xff] }
  0xf3   : > { %v1316_v63 = vadd.f32 %v1300_v16, %v1217_v1  ;;  %v1205_v42 = vadd.f32 %v1189_v34, %v1172_v31  ;;  %v1143_v38 = vmul.f32 %v2339_v58, %v3210_v30  ;;  %v1160_v45 = vmul.f32 %v2321_v47, %v3211_v12  ;;  %v3233_v34 = vld [vmem:[#allocation27_spill] sm:$0xff]  ;;  %v3234_v1 = vld [vmem:[#allocation25_spill] sm:$0xff]  ;;  %v3236_v31 = vld [vmem:[#allocation26_spill] sm:$0xff] }
  0xf4   : > { %v1354_v5 = vadd.f32 %v1338_v51, %v1321_v60  ;;  %v1193_v26 = vmul.f32 %v2341_v59, %v3212_v56  ;;  %v1226_v29 = vmul.f32 %v2343_v61, %v2831_v3  ;;  %v1288_v7 = vadd.f32 %v1272_v14, %v1255_v49 }
  0xf5   : > { %v1415_v4 = vadd.f32 %v1399_v15, %v1316_v63  ;;  %v1243_v35 = vmul.f32 %v2313_v41, %v2672_v44  ;;  %v1276_v53 = vmul.f32 %v2323_v48, %v2834_v39  ;;  %v1176_v30 = vadd.f32 %v1160_v45, %v1143_v38 }
  0xf6   : > { %v1387_v20 = vadd.f32 %v1371_v8, %v1354_v5  ;;  %v1325_v54 = vmul.f32 %v2345_v62, %v2546_v18  ;;  %v1342_v12 = vmul.f32 %v2325_v50, %v2514_v52  ;;  %v1304_v56 = vadd.f32 %v1288_v7, %v1205_v42 }
  0xf7   : > { %1858 = vmatmul.msk.f32.gmra.mxu3 %vm1422_vm6, %v1415_v4  ;;  %v1259_v3 = vadd.f32 %v1243_v35, %v1226_v29  ;;  %v1375_v19 = vmul.f32 %v2355_v9, %v2551_v21  ;;  %v3230_v44 = vrot.slane %v2791_v17, 7  ;;  %v3231_v6 = vrot.slane %v2800_v40, 7 }
  0xf8   : > { %v1209_v24 = vadd.f32 %v1193_v26, %v1176_v30  ;;  %v1358_v22 = vadd.f32 %v1342_v12, %v1325_v54  ;;  %v3232_v18 = vrot.slane %v2791_v17, 1  ;;  %v1152_v52 = vmul.f32 %v2339_v58, %v2694_v23 }
  0xf9   : > { %v1041_v39 = vsel %vm1011_vm5, %v3231_v6, %v3230_v44  ;;  %v1403_v28 = vadd.f32 %v1387_v20, %v1304_v56  ;;  %v1292_v27 = vadd.f32 %v1276_v53, %v1259_v3  ;;  %v1169_v21 = vmul.f32 %v2321_v47, %v2631_v10  ;;  %v3237_v53 = vld [vmem:[#allocation8_spill] sm:$0xff] }
  0xfa   : > { %v1132_v37 = vsel %vm1072_vm4, %v3232_v18, 0.0  ;;  %v1202_v0 = vmul.f32 %v2341_v59, %v3233_v34  ;;  %v1391_v40 = vadd.f32 %v1375_v19, %v1358_v22  ;;  %v1235_v46 = vmul.f32 %v2343_v61, %v3234_v1  ;;  %v3240_v22 = vld [vmem:[#allocation12_spill] sm:$0xff] }
  0xfb   : > { %v1252_v16 = vmul.f32 %v2313_v41, %v3235_v25  ;;  %v1285_v36 = vmul.f32 %v2323_v48, %v3236_v31  ;;  %1846 = vmatmul.msk.f32.gmra.mxu0 %vm1422_vm6, %v1403_v28  ;;  %v1308_v23 = vadd.f32 %v1292_v27, %v1209_v24  ;;  %v1185_v14 = vadd.f32 %v1169_v21, %v1152_v52 }
  0xfc   : > { %v1334_v15 = vmul.f32 %v2345_v62, %v1041_v39  ;;  %v1351_v10 = vmul.f32 %v2325_v50, %v2791_v17  ;;  %v1384_v51 = vmul.f32 %v2355_v9, %v1132_v37  ;;  %v1140_v8 = vmul.f32 %v2339_v58, %v2880_v33  ;;  %v3241_v37 = vld [vmem:[#allocation22_spill] sm:$0xff] }
  0xfd   : > { %v1268_v60 = vadd.f32 %v1252_v16, %v1235_v46  ;;  %v1157_v63 = vmul.f32 %v2321_v47, %v2728_v32  ;;  %v1407_v42 = vadd.f32 %v1391_v40, %v1308_v23  ;;  %v1218_v49 = vadd.f32 %v1202_v0, %v1185_v14 }
  0xfe   : > { %v1367_v38 = vadd.f32 %v1351_v10, %v1334_v15  ;;  %v1190_v5 = vmul.f32 %v2341_v59, %v2871_v55  ;;  %v1223_v17 = vmul.f32 %v2343_v61, %v2858_v13  ;;  %v1240_v29 = vmul.f32 %v2313_v41, %v2733_v11  ;;  %v3238_v13 = vld [vmem:[#allocation9_spill] sm:$0xff]  ;;  %v3239_v11 = vld [vmem:[#allocation19_spill] sm:$0xff] }
  0xff   : > { %v1301_v45 = vadd.f32 %v1285_v36, %v1268_v60  ;;  %v1173_v26 = vadd.f32 %v1157_v63, %v1140_v8  ;;  %1850 = vmatmul.msk.f32.gmra.mxu1 %vm1422_vm6, %v1407_v42  ;;  %v1322_v32 = vmul.f32 %v2345_v62, %v2896_v2  ;;  %v1339_v4 = vmul.f32 %v2325_v50, %v2597_v43 }
 0x100   : > { %v1400_v33 = vadd.f32 %v1384_v51, %v1367_v38  ;;  %v1256_v55 = vadd.f32 %v1240_v29, %v1223_v17  ;;  %v1273_v20 = vmul.f32 %v2323_v48, %v3237_v53  ;;  %v1372_v54 = vmul.f32 %v2355_v9, %v3238_v13 }
 0x101   : > { %v1317_v7 = vadd.f32 %v1301_v45, %v1218_v49  ;;  %v1206_v35 = vadd.f32 %v1190_v5, %v1173_v26  ;;  %v1355_v30 = vadd.f32 %v1339_v4, %v1322_v32  ;;  %v1144_v12 = vmul.f32 %v2339_v58, %v3239_v11 }
 0x102   : > { %v1161_v56 = vmul.f32 %v2321_v47, %v3224_v57  ;;  %v1289_v19 = vadd.f32 %v1273_v20, %v1256_v55  ;;  %v1227_v44 = vmul.f32 %v2343_v61, %v2896_v2  ;;  %v1244_v6 = vmul.f32 %v2313_v41, %v2597_v43  ;;  %v3242_v61 = vld [vmem:[#allocation11_spill] sm:$0xff]  ;;  %v3243_v41 = vld [vmem:[#allocation13_spill] sm:$0xff] }
 0x103   : > { %v1416_v3 = vadd.f32 %v1400_v33, %v1317_v7  ;;  %v1388_v39 = vadd.f32 %v1372_v54, %v1355_v30  ;;  %v1194_v18 = vmul.f32 %v2341_v59, %v3240_v22  ;;  %v1326_v52 = vmul.f32 %v2345_v62, %v3241_v37 }
 0x104   : > { %v1177_v24 = vadd.f32 %v1161_v56, %v1144_v12  ;;  %v1305_v58 = vadd.f32 %v1289_v19, %v1206_v35  ;;  %v1260_v47 = vadd.f32 %v1244_v6, %v1227_v44  ;;  %v1277_v57 = vmul.f32 %v2323_v48, %v3238_v13  ;;  %v1922_v48 = vld [vmem:[%s3114_s9] ss:$0 sm:$0xff] }
 0x105   : > { %1859 = vmatmul.msk.f32.gmra.mxu3 %vm1422_vm6, %v1416_v3  ;;  %v1343_v2 = vmul.f32 %v2325_v50, %v3242_v61  ;;  %v1376_v43 = vmul.f32 %v2355_v9, %v3243_v41 }
 0x106   : > { %v1404_v28 = vadd.f32 %v1388_v39, %v1305_v58  ;;  %v1210_v27 = vadd.f32 %v1194_v18, %v1177_v24  ;;  %v1293_v59 = vadd.f32 %v1277_v57, %v1260_v47 }
 0x107   : > { %v1359_v21 = vadd.f32 %v1343_v2, %v1326_v52 }
 0x108   : > { %1847 = vmatmul.msk.f32.gmra.mxu0 %vm1422_vm6, %v1404_v28  ;;  %v1309_v62 = vadd.f32 %v1293_v59, %v1210_v27 }
 0x109   : > { %v1392_v34 = vadd.f32 %v1376_v43, %v1359_v21 }
 0x10b   : > { %v1408_v0 = vadd.f32 %v1392_v34, %v1309_v62 }
 0x10d   : > { %1851 = vmatmul.msk.f32.gmra.mxu1 %vm1422_vm6, %v1408_v0 }
 0x13f   : > { %v1512_v40 = vpop.f32.mrf.mxu2 }
 0x140   : > { %v1513_v50 = vadd.f32 %v1922_v48, %v1512_v40 }
 0x142   : > { %v1544_v9 = vmax.f32 %v1513_v50, 0.0 }
 0x144   : > { %1560 = vst.msk [vmem:[%s3056_s26 + $0x40] sm:$0xff] %vm1422_vm6, %v1544_v9 }
 0x147   : > { %v1515_v1 = vpop.f32.mrf.mxu2 }
 0x148   : > { %v1516_v25 = vadd.f32 %v1922_v48, %v1515_v1 }
 0x149   : > { %v1524_v46 = vpop.f32.mrf.mxu3 }
 0x14a   : > { %v1525_v16 = vadd.f32 %v1922_v48, %v1524_v46  ;;  %v1545_v31 = vmax.f32 %v1516_v25, 0.0 }
 0x14c   : > { %v1548_v36 = vmax.f32 %v1525_v16, 0.0  ;;  %1561 = vst.msk [vmem:[%s3056_s26 + $0x48] sm:$0xff] %vm1422_vm6, %v1545_v31 }
 0x14e   : > { %1564 = vst.msk [vmem:[%s3056_s26 + $0x60] sm:$0xff] %vm1422_vm6, %v1548_v36 }
 0x14f   : > { %v1518_v23 = vpop.f32.mrf.mxu2 }
 0x150   : > { %v1519_v14 = vadd.f32 %v1922_v48, %v1518_v23 }
 0x152   : > { %v1546_v15 = vmax.f32 %v1519_v14, 0.0 }
 0x154   : > { %v1527_v10 = vpop.f32.mrf.mxu3  ;;  %1562 = vst.msk [vmem:[%s3056_s26 + $0x50] sm:$0xff] %vm1422_vm6, %v1546_v15 }
 0x155   : > { %v1528_v60 = vadd.f32 %v1922_v48, %v1527_v10 }
 0x157   : > { %v1549_v51 = vmax.f32 %v1528_v60, 0.0 }
 0x159   : > { %1565 = vst.msk [vmem:[%s3056_s26 + $0x68] sm:$0xff] %vm1422_vm6, %v1549_v51 }
 0x15a   : > { %v1521_v8 = vpop.f32.mrf.mxu2 }
 0x15b   : > { %v1522_v63 = vadd.f32 %v1922_v48, %v1521_v8 }
 0x15c   : > { %v1488_v42 = vpop.f32.mrf.mxu0 }
 0x15d   : > { %v1547_v49 = vmax.f32 %v1522_v63, 0.0  ;;  %v1489_v38 = vadd.f32 %v1922_v48, %v1488_v42 }
 0x15f   : > { %1563 = vst.msk [vmem:[%s3056_s26 + $0x58] sm:$0xff] %vm1422_vm6, %v1547_v49  ;;  %v1536_v5 = vmax.f32 %v1489_v38, 0.0 }
 0x161   : > { %1552 = vst.msk [vmem:[%s3056_s26] sm:$0xff] %vm1422_vm6, %v1536_v5 }
 0x164   : > { %v1500_v45 = vpop.f32.mrf.mxu1 }
 0x165   : > { %v1501_v26 = vadd.f32 %v1922_v48, %v1500_v45 }
 0x167   : > { %v1540_v17 = vmax.f32 %v1501_v26, 0.0 }
 0x169   : > { %1556 = vst.msk [vmem:[%s3056_s26 + $0x20] sm:$0xff] %vm1422_vm6, %v1540_v17  ;;  %v1491_v29 = vpop.f32.mrf.mxu0 }
 0x16a   : > { %v1492_v33 = vadd.f32 %v1922_v48, %v1491_v29 }
 0x16c   : > { %v1537_v32 = vmax.f32 %v1492_v33, 0.0 }
 0x16e   : > { %1553 = vst.msk [vmem:[%s3056_s26 + $0x8] sm:$0xff] %vm1422_vm6, %v1537_v32  ;;  %v1503_v4 = vpop.f32.mrf.mxu1 }
 0x16f   : > { %v1504_v7 = vadd.f32 %v1922_v48, %v1503_v4 }
 0x171   : > { %v1541_v35 = vmax.f32 %v1504_v7, 0.0 }
 0x173   : > { %1557 = vst.msk [vmem:[%s3056_s26 + $0x28] sm:$0xff] %vm1422_vm6, %v1541_v35 }
 0x178   : > { %v1494_v55 = vpop.f32.mrf.mxu0 }
 0x179   : > { %v1495_v53 = vadd.f32 %v1922_v48, %v1494_v55 }
 0x17a   : > { %v1530_v20 = vpop.f32.mrf.mxu3 }
 0x17b   : > { %v1538_v30 = vmax.f32 %v1495_v53, 0.0  ;;  %v1531_v13 = vadd.f32 %v1922_v48, %v1530_v20 }
 0x17c   : > { %v1506_v54 = vpop.f32.mrf.mxu1 }
 0x17d   : > { %1554 = vst.msk [vmem:[%s3056_s26 + $0x10] sm:$0xff] %vm1422_vm6, %v1538_v30  ;;  %v1507_v11 = vadd.f32 %v1922_v48, %v1506_v54  ;;  %v1550_v12 = vmax.f32 %v1531_v13, 0.0 }
 0x17f   : > { %v1542_v56 = vmax.f32 %v1507_v11, 0.0  ;;  %1566 = vst.msk [vmem:[%s3056_s26 + $0x70] sm:$0xff] %vm1422_vm6, %v1550_v12 }
 0x181   : > { %1558 = vst.msk [vmem:[%s3056_s26 + $0x30] sm:$0xff] %vm1422_vm6, %v1542_v56 }
 0x185   : > { %v1497_v3 = vpop.f32.mrf.mxu0 }
 0x186   : > { %v1498_v19 = vadd.f32 %v1922_v48, %v1497_v3 }
 0x188   : > { %v1533_v44 = vpop.f32.mrf.mxu3  ;;  %v1539_v6 = vmax.f32 %v1498_v19, 0.0 }
 0x189   : > { %v1534_v39 = vadd.f32 %v1922_v48, %v1533_v44 }
 0x18a   : > { %v1509_v24 = vpop.f32.mrf.mxu1  ;;  %1555 = vst.msk [vmem:[%s3056_s26 + $0x18] sm:$0xff] %vm1422_vm6, %v1539_v6 }
 0x18b   : > { %v1510_v22 = vadd.f32 %v1922_v48, %v1509_v24  ;;  %v1551_v18 = vmax.f32 %v1534_v39, 0.0 }
 0x18d   : > { %v1543_v37 = vmax.f32 %v1510_v22, 0.0  ;;  %1567 = vst.msk [vmem:[%s3056_s26 + $0x78] sm:$0xff] %vm1422_vm6, %v1551_v18 }
 0x18f   : > { %1559 = vst.msk [vmem:[%s3056_s26 + $0x38] sm:$0xff] %vm1422_vm6, %v1543_v37 }
 0x190 PF: > { %s21_s17 = sadd.s32 1, %s1982_s17   ;;  %s3244_s14 = sld [smem:[#allocation5_spill]] }
 0x191   : > { %p18_p4 = scmp.ge.s32.totalorder %s21_s17, 6   ;;  %s3245_s24 = sld [smem:[#allocation6_spill]] }
 0x192   : > { %s3246_s16 = sld [smem:[#allocation7_spill]]  ;;  %s3247_s13 = smov %s1974_s15 }
 0x193   :  { %20 = sbr.rel (!%p18_p4) target bundleno = 6 (0x6), region = 110 }
 0x197   : > { %s3248_s15 = smov %s3245_s24 }
 0x198   :  { %1600 = vsyncpa [#allocation3], 1 }
 0x199   :  { %1602 = vsyncpa [#allocation3 + $0x1], 1 }

</bundles_post_ra>
